<compile_context>
chip_gen: v7x
topology: tpu7x:2x2x1
jax: 0.10.0
libtpu: 0.0.40
codegen_flags: <defaults>
</compile_context>

<pallas_src>
import functools
import math

import numpy as np
import jax
import jax.numpy as jnp
from jax import lax
from jax.experimental import pallas as pl
from jax.experimental.pallas import tpu as pltpu


# Matmul input dtype.  f32 keeps bit-faithful semantics vs. the PyTorch reference;
# set to jnp.bfloat16 on v6e/v7x for ~2x MXU throughput (accumulation stays f32).
MATMUL_DTYPE = jnp.float32

MASK_FILL = -1000000000.0   # matches torch masked_fill value


# --------------------------------------------------------------------------
# Fused encoder-layer kernel
# --------------------------------------------------------------------------

def _encoder_layer_kernel(*args, heads, d_k, eps, has_mask):
    """One full encoder layer for one batch element; all intermediates stay in VMEM."""
    if has_mask:
        (x_ref, mask_ref, wqkv_ref, bqkv_ref, wo_ref, bo_ref,
         g1_ref, beta1_ref, w1_ref, b1_ref, w2_ref, b2_ref,
         g2_ref, beta2_ref, o_ref) = args
    else:
        (x_ref, wqkv_ref, bqkv_ref, wo_ref, bo_ref,
         g1_ref, beta1_ref, w1_ref, b1_ref, w2_ref, b2_ref,
         g2_ref, beta2_ref, o_ref) = args
        mask_ref = None

    x = x_ref[0]                                              # (S, D) f32
    D = x.shape[-1]

    def mm(a, b):
        return jnp.dot(a.astype(MATMUL_DTYPE), b.astype(MATMUL_DTYPE),
                       preferred_element_type=jnp.float32)

    def layernorm(h, g, b):
        mean = jnp.mean(h, axis=-1, keepdims=True)
        var = jnp.mean((h - mean) ** 2, axis=-1, keepdims=True)   # unbiased=False
        return g * ((h - mean) * lax.rsqrt(var + eps)) + b

    # ---- fused QKV projection (1/sqrt(d_k) already folded into W_q, b_q) ----
    qkv = mm(x, wqkv_ref[...]) + bqkv_ref[...]                # (S, 3D)
    q = qkv[:, :D]
    k = qkv[:, D:2 * D]
    v = qkv[:, 2 * D:]

    # Mask: (1, Sk) or (Sq, Sk) float; zeros mark masked-out key positions.
    mask = mask_ref[0] if has_mask else None

    # ---- per-head attention (statically unrolled over heads) ----
    head_outs = []
    for h in range(heads):
        sl = slice(h * d_k, (h + 1) * d_k)
        qh, kh, vh = q[:, sl], k[:, sl], v[:, sl]
        # scores = qh @ kh^T  (contract last dims; no materialized transpose)
        s = lax.dot_general(qh.astype(MATMUL_DTYPE), kh.astype(MATMUL_DTYPE),
                            (((1,), (1,)), ((), ())),
                            preferred_element_type=jnp.float32)   # (S, S)
        if mask is not None:
            s = jnp.where(mask == 0.0, MASK_FILL, s)
        s = s - jnp.max(s, axis=-1, keepdims=True)                # stable softmax
        p = jnp.exp(s)
        p = p / jnp.sum(p, axis=-1, keepdims=True)
        head_outs.append(mm(p, vh))                               # (S, d_k)
    concat = jnp.concatenate(head_outs, axis=-1)                  # (S, D) lane-dense

    attn = mm(concat, wo_ref[...]) + bo_ref[...]                  # output projection

    # ---- residual + LayerNorm 1 ----
    y1 = layernorm(x + attn, g1_ref[...], beta1_ref[...])

    # ---- feed-forward: lin1 + ReLU + lin2, (S, d_ff) intermediate stays in VMEM ----
    a = jnp.maximum(mm(y1, w1_ref[...]) + b1_ref[...], 0.0)       # (S, d_ff)
    f = mm(a, w2_ref[...]) + b2_ref[...]                          # (S, D)

    # ---- residual + LayerNorm 2 ----
    o_ref[0] = layernorm(y1 + f, g2_ref[...], beta2_ref[...])


def encoder_layer(x, lp, heads, mask=None, eps=1e-6):
    """x: (B, S, D) -> (B, S, D); one grid step per batch element."""
    B, S, D = x.shape
    d_ff = lp["w1"].shape[1]
    d_k = D // heads
    has_mask = mask is not None

    def full(shape):
        # weight / bias blocks: full-array, same block every grid step (stays resident)
        return pl.BlockSpec(shape, lambda b: (0,) * len(shape))

    in_specs = [pl.BlockSpec((1, S, D), lambda b: (b, 0, 0))]     # x
    operands = [x]
    if has_mask:
        mask = jnp.asarray(mask, jnp.float32)
        if mask.ndim == 2:                                        # (B, S_k) padding mask
            mask = mask[:, None, :]
        Mq, Mk = mask.shape[1], mask.shape[2]
        in_specs.append(pl.BlockSpec((1, Mq, Mk), lambda b: (b, 0, 0)))
        operands.append(mask)

    in_specs += [
        full((D, 3 * D)), full((1, 3 * D)),             # fused QKV weight/bias
        full((D, D)), full((1, D)),                     # out-proj weight/bias
        full((1, D)), full((1, D)),                     # norm1 gamma/beta
        full((D, d_ff)), full((1, d_ff)),               # ff lin1 weight/bias
        full((d_ff, D)), full((1, D)),                  # ff lin2 weight/bias
        full((1, D)), full((1, D)),                     # norm2 gamma/beta
    ]
    operands += [
        lp["wqkv"], lp["bqkv"], lp["wo"], lp["bo"],
        lp["g1"], lp["beta1"],
        lp["w1"], lp["b1"], lp["w2"], lp["b2"],
        lp["g2"], lp["beta2"],
    ]

    return pl.pallas_call(
        functools.partial(_encoder_layer_kernel, heads=heads, d_k=d_k, eps=eps,
                          has_mask=has_mask),
        out_shape=jax.ShapeDtypeStruct((B, S, D), jnp.float32),
        grid=(B,),
        in_specs=in_specs,
        out_specs=pl.BlockSpec((1, S, D), lambda b: (b, 0, 0)),
        compiler_params=pltpu.CompilerParams(dimension_semantics=("parallel",)),
    )(*operands)


# --------------------------------------------------------------------------
# Parameter construction (deterministic, synthetic; PyTorch-style init)
# --------------------------------------------------------------------------

def _init_linear(key, fan_in, fan_out):
    kw, kb = jax.random.split(key)
    bound = 1.0 / math.sqrt(fan_in)
    w = jax.random.uniform(kw, (fan_in, fan_out), jnp.float32, -bound, bound)
    b = jax.random.uniform(kb, (fan_out,), jnp.float32, -bound, bound)
    return w, b


def init_encoder_layer_params(key, d_model, heads, d_ff):
    kq, kk, kv, ko, k1, k2 = jax.random.split(key, 6)
    d_k = d_model // heads
    wq, bq = _init_linear(kq, d_model, d_model)
    wk, bk = _init_linear(kk, d_model, d_model)
    wv, bv = _init_linear(kv, d_model, d_model)
    wo, bo = _init_linear(ko, d_model, d_model)
    w1, b1 = _init_linear(k1, d_model, d_ff)
    w2, b2 = _init_linear(k2, d_ff, d_model)

    # Fold the 1/sqrt(d_k) softmax scale into the Q projection and fuse Q|K|V.
    scale = 1.0 / math.sqrt(d_k)
    wqkv = jnp.concatenate([wq * scale, wk, wv], axis=1)       # (D, 3D)
    bqkv = jnp.concatenate([bq * scale, bk, bv])[None, :]      # (1, 3D)

    ones = jnp.ones((1, d_model), jnp.float32)
    zeros = jnp.zeros((1, d_model), jnp.float32)
    return {
        "wqkv": wqkv, "bqkv": bqkv,
        "wo": wo, "bo": bo[None, :],
        "w1": w1, "b1": b1[None, :],
        "w2": w2, "b2": b2[None, :],
        "g1": ones, "beta1": zeros,
        "g2": ones, "beta2": zeros,
    }


def positional_encoding_table(max_seq_len, d_model):
    pe = np.zeros((max_seq_len, d_model), dtype=np.float32)
    for pos in range(max_seq_len):
        for i in range(0, d_model, 2):
            pe[pos, i] = math.sin(pos / 10000 ** (i / d_model))
            pe[pos, i + 1] = math.cos(pos / 10000 ** (i / d_model))
    return jnp.asarray(pe)


def init_encoder(key, vocab_size, d_model, n_layers, heads, max_seq_len, d_ff):
    k_emb, k_layers = jax.random.split(key)
    layer_keys = jax.random.split(k_layers, n_layers)
    return {
        "emb": jax.random.normal(k_emb, (vocab_size, d_model), jnp.float32),
        "pe": positional_encoding_table(max_seq_len, d_model),
        "layers": [init_encoder_layer_params(k, d_model, heads, d_ff)
                   for k in layer_keys],
        "config": {"d_model": d_model, "heads": heads},
    }


# --------------------------------------------------------------------------
# Encoder forward (JAX glue around the fused per-layer Pallas kernel)
# --------------------------------------------------------------------------

def encoder_forward(params, src, mask=None):
    d_model = params["config"]["d_model"]
    heads = params["config"]["heads"]

    x = jnp.take(params["emb"], src, axis=0)                   # (B, S, D) gather (glue)
    x = x * math.sqrt(d_model)
    x = x + params["pe"][: src.shape[1], :]

    for lp in params["layers"]:
        x = encoder_layer(x, lp, heads, mask=mask)              # 1 pallas_call / layer
    return x


# --------------------------------------------------------------------------
# Main
# --------------------------------------------------------------------------

if __name__ == "__main__":
    VOCAB = 16
    D_MODEL = 32
    N_LAYERS = 2
    HEADS = 4
    MAX_SEQ_LEN = 16
    D_FF = 2048          # PyTorch FeedForward default d_ff
    BATCH = 2
    SEQ = 8

    root = jax.random.PRNGKey(0)
    k_params, k_src = jax.random.split(root)

    params = init_encoder(k_params, VOCAB, D_MODEL, N_LAYERS, HEADS,
                          MAX_SEQ_LEN, D_FF)
    src = jax.random.randint(k_src, (BATCH, SEQ), 0, VOCAB, dtype=jnp.int32)

    # mask=None path (reference usage).
    out = encoder_forward(params, src, mask=None)
    out = jax.block_until_ready(out)
    assert out.shape == (BATCH, SEQ, D_MODEL)
    assert bool(jnp.all(jnp.isfinite(out)))

    # Padding-mask path: last two key positions of batch element 1 are masked out.
    pad_mask = np.ones((BATCH, 1, SEQ), dtype=np.float32)
    pad_mask[1, 0, -2:] = 0.0
    out_m = encoder_forward(params, src, mask=jnp.asarray(pad_mask))
    out_m = jax.block_until_ready(out_m)
    assert out_m.shape == (BATCH, SEQ, D_MODEL)
    assert bool(jnp.all(jnp.isfinite(out_m)))

    print("KERNEL_OK")
</pallas_src>

<mosaic_0001>
module attributes {stable_mosaic.version = 11 : i64} {
  func.func @_encoder_layer_kernel(%arg0: i32, %arg1: memref<1x8x32xf32, #tpu.memory_space<vmem>>, %arg2: memref<32x96xf32, #tpu.memory_space<vmem>>, %arg3: memref<1x96xf32, #tpu.memory_space<vmem>>, %arg4: memref<32x32xf32, #tpu.memory_space<vmem>>, %arg5: memref<1x32xf32, #tpu.memory_space<vmem>>, %arg6: memref<1x32xf32, #tpu.memory_space<vmem>>, %arg7: memref<1x32xf32, #tpu.memory_space<vmem>>, %arg8: memref<32x2048xf32, #tpu.memory_space<vmem>>, %arg9: memref<1x2048xf32, #tpu.memory_space<vmem>>, %arg10: memref<2048x32xf32, #tpu.memory_space<vmem>>, %arg11: memref<1x32xf32, #tpu.memory_space<vmem>>, %arg12: memref<1x32xf32, #tpu.memory_space<vmem>>, %arg13: memref<1x32xf32, #tpu.memory_space<vmem>>, %arg14: memref<1x8x32xf32, #tpu.memory_space<vmem>>) attributes {dimension_semantics = [#tpu.dimension_semantics<parallel>], iteration_bounds = array<i64: 2>, scalar_prefetch = 0 : i64, scratch_operands = 0 : i64, tpu.core_type = #tpu.core_type<tc>, window_params = [{transform_indices = @transform_0, window_bounds = array<i64: 1, 8, 32>}, {pipeline_mode = #tpu.pipeline_mode<synchronous>, transform_indices = @transform_1, window_bounds = array<i64: 32, 96>}, {pipeline_mode = #tpu.pipeline_mode<synchronous>, transform_indices = @transform_2, window_bounds = array<i64: 1, 96>}, {pipeline_mode = #tpu.pipeline_mode<synchronous>, transform_indices = @transform_3, window_bounds = array<i64: 32, 32>}, {pipeline_mode = #tpu.pipeline_mode<synchronous>, transform_indices = @transform_4, window_bounds = array<i64: 1, 32>}, {pipeline_mode = #tpu.pipeline_mode<synchronous>, transform_indices = @transform_5, window_bounds = array<i64: 1, 32>}, {pipeline_mode = #tpu.pipeline_mode<synchronous>, transform_indices = @transform_6, window_bounds = array<i64: 1, 32>}, {pipeline_mode = #tpu.pipeline_mode<synchronous>, transform_indices = @transform_7, window_bounds = array<i64: 32, 2048>}, {pipeline_mode = #tpu.pipeline_mode<synchronous>, transform_indices = @transform_8, window_bounds = array<i64: 1, 2048>}, {pipeline_mode = #tpu.pipeline_mode<synchronous>, transform_indices = @transform_9, window_bounds = array<i64: 2048, 32>}, {pipeline_mode = #tpu.pipeline_mode<synchronous>, transform_indices = @transform_10, window_bounds = array<i64: 1, 32>}, {pipeline_mode = #tpu.pipeline_mode<synchronous>, transform_indices = @transform_11, window_bounds = array<i64: 1, 32>}, {pipeline_mode = #tpu.pipeline_mode<synchronous>, transform_indices = @transform_12, window_bounds = array<i64: 1, 32>}, {transform_indices = @transform_13, window_bounds = array<i64: 1, 8, 32>}]} {
    %c0 = arith.constant 0 : index
    %c0_0 = arith.constant 0 : index
    %c0_1 = arith.constant 0 : index
    %0 = vector.load %arg1[%c0, %c0_0, %c0_1] : memref<1x8x32xf32, #tpu.memory_space<vmem>>, vector<1x8x32xf32>
    %1 = vector.shape_cast %0 : vector<1x8x32xf32> to vector<8x32xf32>
    %c0_2 = arith.constant 0 : index
    %c0_3 = arith.constant 0 : index
    %2 = vector.load %arg2[%c0_2, %c0_3] : memref<32x96xf32, #tpu.memory_space<vmem>>, vector<32x96xf32>
    %cst = arith.constant dense<0.000000e+00> : vector<8x96xf32>
    %3 = tpu.matmul %1, %2, %cst {dimension_numbers = #tpu.dot_dimension_numbers<[1], [0], [0], [1], [0, 0, 1, 1], [], []>} : vector<8x32xf32>, vector<32x96xf32>, vector<8x96xf32> -> vector<8x96xf32>
    %c0_4 = arith.constant 0 : index
    %c0_5 = arith.constant 0 : index
    %4 = vector.load %arg3[%c0_4, %c0_5] : memref<1x96xf32, #tpu.memory_space<vmem>>, vector<1x96xf32>
    %5 = vector.broadcast %4 : vector<1x96xf32> to vector<8x96xf32>
    %6 = arith.addf %3, %5 : vector<8x96xf32>
    %7 = vector.extract_strided_slice %6 {offsets = [0, 0], sizes = [8, 32], strides = [1, 1]} : vector<8x96xf32> to vector<8x32xf32>
    %8 = vector.extract_strided_slice %6 {offsets = [0, 32], sizes = [8, 32], strides = [1, 1]} : vector<8x96xf32> to vector<8x32xf32>
    %9 = vector.extract_strided_slice %6 {offsets = [0, 64], sizes = [8, 32], strides = [1, 1]} : vector<8x96xf32> to vector<8x32xf32>
    %10 = vector.extract_strided_slice %7 {offsets = [0, 0], sizes = [8, 8], strides = [1, 1]} : vector<8x32xf32> to vector<8x8xf32>
    %11 = vector.extract_strided_slice %8 {offsets = [0, 0], sizes = [8, 8], strides = [1, 1]} : vector<8x32xf32> to vector<8x8xf32>
    %12 = vector.extract_strided_slice %9 {offsets = [0, 0], sizes = [8, 8], strides = [1, 1]} : vector<8x32xf32> to vector<8x8xf32>
    %cst_6 = arith.constant dense<0.000000e+00> : vector<8x8xf32>
    %13 = tpu.matmul %10, %11, %cst_6 {dimension_numbers = #tpu.dot_dimension_numbers<[1], [1], [0], [0], [0, 0, 1, 0], [], []>} : vector<8x8xf32>, vector<8x8xf32>, vector<8x8xf32> -> vector<8x8xf32>
    %cst_7 = arith.constant dense<0xFF800000> : vector<8xf32>
    %14 = vector.multi_reduction <maximumf>, %13, %cst_7 [1] : vector<8x8xf32> to vector<8xf32>
    %15 = vector.shape_cast %14 : vector<8xf32> to vector<8x1xf32>
    %16 = vector.broadcast %15 : vector<8x1xf32> to vector<8x8xf32>
    %17 = arith.subf %13, %16 : vector<8x8xf32>
    %18 = math.exp %17 : vector<8x8xf32>
    %cst_8 = arith.constant dense<0.000000e+00> : vector<8xf32>
    %19 = vector.multi_reduction <add>, %18, %cst_8 [1] : vector<8x8xf32> to vector<8xf32>
    %20 = vector.shape_cast %19 : vector<8xf32> to vector<8x1xf32>
    %21 = vector.broadcast %20 : vector<8x1xf32> to vector<8x8xf32>
    %22 = arith.divf %18, %21 : vector<8x8xf32>
    %cst_9 = arith.constant dense<0.000000e+00> : vector<8x8xf32>
    %23 = tpu.matmul %22, %12, %cst_9 {dimension_numbers = #tpu.dot_dimension_numbers<[1], [0], [0], [1], [0, 0, 1, 1], [], []>} : vector<8x8xf32>, vector<8x8xf32>, vector<8x8xf32> -> vector<8x8xf32>
    %24 = vector.extract_strided_slice %7 {offsets = [0, 8], sizes = [8, 8], strides = [1, 1]} : vector<8x32xf32> to vector<8x8xf32>
    %25 = vector.extract_strided_slice %8 {offsets = [0, 8], sizes = [8, 8], strides = [1, 1]} : vector<8x32xf32> to vector<8x8xf32>
    %26 = vector.extract_strided_slice %9 {offsets = [0, 8], sizes = [8, 8], strides = [1, 1]} : vector<8x32xf32> to vector<8x8xf32>
    %cst_10 = arith.constant dense<0.000000e+00> : vector<8x8xf32>
    %27 = tpu.matmul %24, %25, %cst_10 {dimension_numbers = #tpu.dot_dimension_numbers<[1], [1], [0], [0], [0, 0, 1, 0], [], []>} : vector<8x8xf32>, vector<8x8xf32>, vector<8x8xf32> -> vector<8x8xf32>
    %cst_11 = arith.constant dense<0xFF800000> : vector<8xf32>
    %28 = vector.multi_reduction <maximumf>, %27, %cst_11 [1] : vector<8x8xf32> to vector<8xf32>
    %29 = vector.shape_cast %28 : vector<8xf32> to vector<8x1xf32>
    %30 = vector.broadcast %29 : vector<8x1xf32> to vector<8x8xf32>
    %31 = arith.subf %27, %30 : vector<8x8xf32>
    %32 = math.exp %31 : vector<8x8xf32>
    %cst_12 = arith.constant dense<0.000000e+00> : vector<8xf32>
    %33 = vector.multi_reduction <add>, %32, %cst_12 [1] : vector<8x8xf32> to vector<8xf32>
    %34 = vector.shape_cast %33 : vector<8xf32> to vector<8x1xf32>
    %35 = vector.broadcast %34 : vector<8x1xf32> to vector<8x8xf32>
    %36 = arith.divf %32, %35 : vector<8x8xf32>
    %cst_13 = arith.constant dense<0.000000e+00> : vector<8x8xf32>
    %37 = tpu.matmul %36, %26, %cst_13 {dimension_numbers = #tpu.dot_dimension_numbers<[1], [0], [0], [1], [0, 0, 1, 1], [], []>} : vector<8x8xf32>, vector<8x8xf32>, vector<8x8xf32> -> vector<8x8xf32>
    %38 = vector.extract_strided_slice %7 {offsets = [0, 16], sizes = [8, 8], strides = [1, 1]} : vector<8x32xf32> to vector<8x8xf32>
    %39 = vector.extract_strided_slice %8 {offsets = [0, 16], sizes = [8, 8], strides = [1, 1]} : vector<8x32xf32> to vector<8x8xf32>
    %40 = vector.extract_strided_slice %9 {offsets = [0, 16], sizes = [8, 8], strides = [1, 1]} : vector<8x32xf32> to vector<8x8xf32>
    %cst_14 = arith.constant dense<0.000000e+00> : vector<8x8xf32>
    %41 = tpu.matmul %38, %39, %cst_14 {dimension_numbers = #tpu.dot_dimension_numbers<[1], [1], [0], [0], [0, 0, 1, 0], [], []>} : vector<8x8xf32>, vector<8x8xf32>, vector<8x8xf32> -> vector<8x8xf32>
    %cst_15 = arith.constant dense<0xFF800000> : vector<8xf32>
    %42 = vector.multi_reduction <maximumf>, %41, %cst_15 [1] : vector<8x8xf32> to vector<8xf32>
    %43 = vector.shape_cast %42 : vector<8xf32> to vector<8x1xf32>
    %44 = vector.broadcast %43 : vector<8x1xf32> to vector<8x8xf32>
    %45 = arith.subf %41, %44 : vector<8x8xf32>
    %46 = math.exp %45 : vector<8x8xf32>
    %cst_16 = arith.constant dense<0.000000e+00> : vector<8xf32>
    %47 = vector.multi_reduction <add>, %46, %cst_16 [1] : vector<8x8xf32> to vector<8xf32>
    %48 = vector.shape_cast %47 : vector<8xf32> to vector<8x1xf32>
    %49 = vector.broadcast %48 : vector<8x1xf32> to vector<8x8xf32>
    %50 = arith.divf %46, %49 : vector<8x8xf32>
    %cst_17 = arith.constant dense<0.000000e+00> : vector<8x8xf32>
    %51 = tpu.matmul %50, %40, %cst_17 {dimension_numbers = #tpu.dot_dimension_numbers<[1], [0], [0], [1], [0, 0, 1, 1], [], []>} : vector<8x8xf32>, vector<8x8xf32>, vector<8x8xf32> -> vector<8x8xf32>
    %52 = vector.extract_strided_slice %7 {offsets = [0, 24], sizes = [8, 8], strides = [1, 1]} : vector<8x32xf32> to vector<8x8xf32>
    %53 = vector.extract_strided_slice %8 {offsets = [0, 24], sizes = [8, 8], strides = [1, 1]} : vector<8x32xf32> to vector<8x8xf32>
    %54 = vector.extract_strided_slice %9 {offsets = [0, 24], sizes = [8, 8], strides = [1, 1]} : vector<8x32xf32> to vector<8x8xf32>
    %cst_18 = arith.constant dense<0.000000e+00> : vector<8x8xf32>
    %55 = tpu.matmul %52, %53, %cst_18 {dimension_numbers = #tpu.dot_dimension_numbers<[1], [1], [0], [0], [0, 0, 1, 0], [], []>} : vector<8x8xf32>, vector<8x8xf32>, vector<8x8xf32> -> vector<8x8xf32>
    %cst_19 = arith.constant dense<0xFF800000> : vector<8xf32>
    %56 = vector.multi_reduction <maximumf>, %55, %cst_19 [1] : vector<8x8xf32> to vector<8xf32>
    %57 = vector.shape_cast %56 : vector<8xf32> to vector<8x1xf32>
    %58 = vector.broadcast %57 : vector<8x1xf32> to vector<8x8xf32>
    %59 = arith.subf %55, %58 : vector<8x8xf32>
    %60 = math.exp %59 : vector<8x8xf32>
    %cst_20 = arith.constant dense<0.000000e+00> : vector<8xf32>
    %61 = vector.multi_reduction <add>, %60, %cst_20 [1] : vector<8x8xf32> to vector<8xf32>
    %62 = vector.shape_cast %61 : vector<8xf32> to vector<8x1xf32>
    %63 = vector.broadcast %62 : vector<8x1xf32> to vector<8x8xf32>
    %64 = arith.divf %60, %63 : vector<8x8xf32>
    %cst_21 = arith.constant dense<0.000000e+00> : vector<8x8xf32>
    %65 = tpu.matmul %64, %54, %cst_21 {dimension_numbers = #tpu.dot_dimension_numbers<[1], [0], [0], [1], [0, 0, 1, 1], [], []>} : vector<8x8xf32>, vector<8x8xf32>, vector<8x8xf32> -> vector<8x8xf32>
    %66 = tpu.concatenate %23, %37, %51, %65 in 1 : vector<8x8xf32>, vector<8x8xf32>, vector<8x8xf32>, vector<8x8xf32> -> vector<8x32xf32>
    %c0_22 = arith.constant 0 : index
    %c0_23 = arith.constant 0 : index
    %67 = vector.load %arg4[%c0_22, %c0_23] : memref<32x32xf32, #tpu.memory_space<vmem>>, vector<32x32xf32>
    %cst_24 = arith.constant dense<0.000000e+00> : vector<8x32xf32>
    %68 = tpu.matmul %66, %67, %cst_24 {dimension_numbers = #tpu.dot_dimension_numbers<[1], [0], [0], [1], [0, 0, 1, 1], [], []>} : vector<8x32xf32>, vector<32x32xf32>, vector<8x32xf32> -> vector<8x32xf32>
    %c0_25 = arith.constant 0 : index
    %c0_26 = arith.constant 0 : index
    %69 = vector.load %arg5[%c0_25, %c0_26] : memref<1x32xf32, #tpu.memory_space<vmem>>, vector<1x32xf32>
    %70 = vector.broadcast %69 : vector<1x32xf32> to vector<8x32xf32>
    %71 = arith.addf %68, %70 : vector<8x32xf32>
    %72 = arith.addf %1, %71 : vector<8x32xf32>
    %c0_27 = arith.constant 0 : index
    %c0_28 = arith.constant 0 : index
    %73 = vector.load %arg6[%c0_27, %c0_28] : memref<1x32xf32, #tpu.memory_space<vmem>>, vector<1x32xf32>
    %c0_29 = arith.constant 0 : index
    %c0_30 = arith.constant 0 : index
    %74 = vector.load %arg7[%c0_29, %c0_30] : memref<1x32xf32, #tpu.memory_space<vmem>>, vector<1x32xf32>
    %cst_31 = arith.constant dense<0.000000e+00> : vector<8xf32>
    %75 = vector.multi_reduction <add>, %72, %cst_31 [1] : vector<8x32xf32> to vector<8xf32>
    %76 = vector.shape_cast %75 : vector<8xf32> to vector<8x1xf32>
    %cst_32 = arith.constant 3.200000e+01 : f32
    %77 = vector.broadcast %cst_32 : f32 to vector<8x1xf32>
    %78 = arith.divf %76, %77 : vector<8x1xf32>
    %79 = vector.broadcast %78 : vector<8x1xf32> to vector<8x32xf32>
    %80 = arith.subf %72, %79 : vector<8x32xf32>
    %81 = arith.mulf %80, %80 : vector<8x32xf32>
    %cst_33 = arith.constant dense<0.000000e+00> : vector<8xf32>
    %82 = vector.multi_reduction <add>, %81, %cst_33 [1] : vector<8x32xf32> to vector<8xf32>
    %83 = vector.shape_cast %82 : vector<8xf32> to vector<8x1xf32>
    %cst_34 = arith.constant 3.200000e+01 : f32
    %84 = vector.broadcast %cst_34 : f32 to vector<8x1xf32>
    %85 = arith.divf %83, %84 : vector<8x1xf32>
    %86 = vector.broadcast %78 : vector<8x1xf32> to vector<8x32xf32>
    %87 = arith.subf %72, %86 : vector<8x32xf32>
    %cst_35 = arith.constant 9.99999997E-7 : f32
    %88 = vector.broadcast %cst_35 : f32 to vector<8x1xf32>
    %89 = arith.addf %85, %88 : vector<8x1xf32>
    %90 = math.rsqrt %89 : vector<8x1xf32>
    %91 = vector.broadcast %90 : vector<8x1xf32> to vector<8x32xf32>
    %92 = arith.mulf %87, %91 : vector<8x32xf32>
    %93 = vector.broadcast %73 : vector<1x32xf32> to vector<8x32xf32>
    %94 = arith.mulf %93, %92 : vector<8x32xf32>
    %95 = vector.broadcast %74 : vector<1x32xf32> to vector<8x32xf32>
    %96 = arith.addf %94, %95 : vector<8x32xf32>
    %c0_36 = arith.constant 0 : index
    %c0_37 = arith.constant 0 : index
    %97 = vector.load %arg8[%c0_36, %c0_37] : memref<32x2048xf32, #tpu.memory_space<vmem>>, vector<32x2048xf32>
    %cst_38 = arith.constant dense<0.000000e+00> : vector<8x2048xf32>
    %98 = tpu.matmul %96, %97, %cst_38 {dimension_numbers = #tpu.dot_dimension_numbers<[1], [0], [0], [1], [0, 0, 1, 1], [], []>} : vector<8x32xf32>, vector<32x2048xf32>, vector<8x2048xf32> -> vector<8x2048xf32>
    %c0_39 = arith.constant 0 : index
    %c0_40 = arith.constant 0 : index
    %99 = vector.load %arg9[%c0_39, %c0_40] : memref<1x2048xf32, #tpu.memory_space<vmem>>, vector<1x2048xf32>
    %100 = vector.broadcast %99 : vector<1x2048xf32> to vector<8x2048xf32>
    %101 = arith.addf %98, %100 : vector<8x2048xf32>
    %cst_41 = arith.constant 0.000000e+00 : f32
    %102 = vector.broadcast %cst_41 : f32 to vector<8x2048xf32>
    %103 = arith.maximumf %101, %102 : vector<8x2048xf32>
    %c0_42 = arith.constant 0 : index
    %c0_43 = arith.constant 0 : index
    %104 = vector.load %arg10[%c0_42, %c0_43] : memref<2048x32xf32, #tpu.memory_space<vmem>>, vector<2048x32xf32>
    %cst_44 = arith.constant dense<0.000000e+00> : vector<8x32xf32>
    %105 = tpu.matmul %103, %104, %cst_44 {dimension_numbers = #tpu.dot_dimension_numbers<[1], [0], [0], [1], [0, 0, 1, 1], [], []>} : vector<8x2048xf32>, vector<2048x32xf32>, vector<8x32xf32> -> vector<8x32xf32>
    %c0_45 = arith.constant 0 : index
    %c0_46 = arith.constant 0 : index
    %106 = vector.load %arg11[%c0_45, %c0_46] : memref<1x32xf32, #tpu.memory_space<vmem>>, vector<1x32xf32>
    %107 = vector.broadcast %106 : vector<1x32xf32> to vector<8x32xf32>
    %108 = arith.addf %105, %107 : vector<8x32xf32>
    %109 = arith.addf %96, %108 : vector<8x32xf32>
    %c0_47 = arith.constant 0 : index
    %c0_48 = arith.constant 0 : index
    %110 = vector.load %arg12[%c0_47, %c0_48] : memref<1x32xf32, #tpu.memory_space<vmem>>, vector<1x32xf32>
    %c0_49 = arith.constant 0 : index
    %c0_50 = arith.constant 0 : index
    %111 = vector.load %arg13[%c0_49, %c0_50] : memref<1x32xf32, #tpu.memory_space<vmem>>, vector<1x32xf32>
    %cst_51 = arith.constant dense<0.000000e+00> : vector<8xf32>
    %112 = vector.multi_reduction <add>, %109, %cst_51 [1] : vector<8x32xf32> to vector<8xf32>
    %113 = vector.shape_cast %112 : vector<8xf32> to vector<8x1xf32>
    %cst_52 = arith.constant 3.200000e+01 : f32
    %114 = vector.broadcast %cst_52 : f32 to vector<8x1xf32>
    %115 = arith.divf %113, %114 : vector<8x1xf32>
    %116 = vector.broadcast %115 : vector<8x1xf32> to vector<8x32xf32>
    %117 = arith.subf %109, %116 : vector<8x32xf32>
    %118 = arith.mulf %117, %117 : vector<8x32xf32>
    %cst_53 = arith.constant dense<0.000000e+00> : vector<8xf32>
    %119 = vector.multi_reduction <add>, %118, %cst_53 [1] : vector<8x32xf32> to vector<8xf32>
    %120 = vector.shape_cast %119 : vector<8xf32> to vector<8x1xf32>
    %cst_54 = arith.constant 3.200000e+01 : f32
    %121 = vector.broadcast %cst_54 : f32 to vector<8x1xf32>
    %122 = arith.divf %120, %121 : vector<8x1xf32>
    %123 = vector.broadcast %115 : vector<8x1xf32> to vector<8x32xf32>
    %124 = arith.subf %109, %123 : vector<8x32xf32>
    %cst_55 = arith.constant 9.99999997E-7 : f32
    %125 = vector.broadcast %cst_55 : f32 to vector<8x1xf32>
    %126 = arith.addf %122, %125 : vector<8x1xf32>
    %127 = math.rsqrt %126 : vector<8x1xf32>
    %128 = vector.broadcast %127 : vector<8x1xf32> to vector<8x32xf32>
    %129 = arith.mulf %124, %128 : vector<8x32xf32>
    %130 = vector.broadcast %110 : vector<1x32xf32> to vector<8x32xf32>
    %131 = arith.mulf %130, %129 : vector<8x32xf32>
    %132 = vector.broadcast %111 : vector<1x32xf32> to vector<8x32xf32>
    %133 = arith.addf %131, %132 : vector<8x32xf32>
    %c0_56 = arith.constant 0 : index
    %c0_57 = arith.constant 0 : index
    %c0_58 = arith.constant 0 : index
    %134 = vector.load %arg14[%c0_56, %c0_57, %c0_58] : memref<1x8x32xf32, #tpu.memory_space<vmem>>, vector<1x8x32xf32>
    %135 = vector.shape_cast %134 : vector<1x8x32xf32> to vector<8x32xf32>
    %136 = vector.shape_cast %133 : vector<8x32xf32> to vector<1x8x32xf32>
    tpu.vector_store %arg14[%c0_56, %c0_57, %c0_58], %136 {strides = array<i32>} : memref<1x8x32xf32, #tpu.memory_space<vmem>>, vector<1x8x32xf32>,
    return
  }
  func.func @transform_0(%arg0: i32) -> (i32, i32, i32) {
    %c0_i32 = arith.constant 0 : i32
    %c0_i32_0 = arith.constant 0 : i32
    %c0_i32_1 = arith.constant 0 : i32
    return %arg0, %c0_i32, %c0_i32_0 : i32, i32, i32
  }
  func.func @transform_1(%arg0: i32) -> (i32, i32) {
    %c0_i32 = arith.constant 0 : i32
    %c0_i32_0 = arith.constant 0 : i32
    %c0_i32_1 = arith.constant 0 : i32
    return %c0_i32, %c0_i32_0 : i32, i32
  }
  func.func @transform_2(%arg0: i32) -> (i32, i32) {
    %c0_i32 = arith.constant 0 : i32
    %c0_i32_0 = arith.constant 0 : i32
    %c0_i32_1 = arith.constant 0 : i32
    return %c0_i32, %c0_i32_0 : i32, i32
  }
  func.func @transform_3(%arg0: i32) -> (i32, i32) {
    %c0_i32 = arith.constant 0 : i32
    %c0_i32_0 = arith.constant 0 : i32
    %c0_i32_1 = arith.constant 0 : i32
    return %c0_i32, %c0_i32_0 : i32, i32
  }
  func.func @transform_4(%arg0: i32) -> (i32, i32) {
    %c0_i32 = arith.constant 0 : i32
    %c0_i32_0 = arith.constant 0 : i32
    %c0_i32_1 = arith.constant 0 : i32
    return %c0_i32, %c0_i32_0 : i32, i32
  }
  func.func @transform_5(%arg0: i32) -> (i32, i32) {
    %c0_i32 = arith.constant 0 : i32
    %c0_i32_0 = arith.constant 0 : i32
    %c0_i32_1 = arith.constant 0 : i32
    return %c0_i32, %c0_i32_0 : i32, i32
  }
  func.func @transform_6(%arg0: i32) -> (i32, i32) {
    %c0_i32 = arith.constant 0 : i32
    %c0_i32_0 = arith.constant 0 : i32
    %c0_i32_1 = arith.constant 0 : i32
    return %c0_i32, %c0_i32_0 : i32, i32
  }
  func.func @transform_7(%arg0: i32) -> (i32, i32) {
    %c0_i32 = arith.constant 0 : i32
    %c0_i32_0 = arith.constant 0 : i32
    %c0_i32_1 = arith.constant 0 : i32
    return %c0_i32, %c0_i32_0 : i32, i32
  }
  func.func @transform_8(%arg0: i32) -> (i32, i32) {
    %c0_i32 = arith.constant 0 : i32
    %c0_i32_0 = arith.constant 0 : i32
    %c0_i32_1 = arith.constant 0 : i32
    return %c0_i32, %c0_i32_0 : i32, i32
  }
  func.func @transform_9(%arg0: i32) -> (i32, i32) {
    %c0_i32 = arith.constant 0 : i32
    %c0_i32_0 = arith.constant 0 : i32
    %c0_i32_1 = arith.constant 0 : i32
    return %c0_i32, %c0_i32_0 : i32, i32
  }
  func.func @transform_10(%arg0: i32) -> (i32, i32) {
    %c0_i32 = arith.constant 0 : i32
    %c0_i32_0 = arith.constant 0 : i32
    %c0_i32_1 = arith.constant 0 : i32
    return %c0_i32, %c0_i32_0 : i32, i32
  }
  func.func @transform_11(%arg0: i32) -> (i32, i32) {
    %c0_i32 = arith.constant 0 : i32
    %c0_i32_0 = arith.constant 0 : i32
    %c0_i32_1 = arith.constant 0 : i32
    return %c0_i32, %c0_i32_0 : i32, i32
  }
  func.func @transform_12(%arg0: i32) -> (i32, i32) {
    %c0_i32 = arith.constant 0 : i32
    %c0_i32_0 = arith.constant 0 : i32
    %c0_i32_1 = arith.constant 0 : i32
    return %c0_i32, %c0_i32_0 : i32, i32
  }
  func.func @transform_13(%arg0: i32) -> (i32, i32, i32) {
    %c0_i32 = arith.constant 0 : i32
    %c0_i32_0 = arith.constant 0 : i32
    %c0_i32_1 = arith.constant 0 : i32
    return %arg0, %c0_i32, %c0_i32_0 : i32, i32, i32
  }
}

</mosaic_0001>

<bundles_post_ra>
// kernel: tpu_custom_call.1
= control target key start
LH: loop header
LB: loop body
LE: loop exit
PB: predicated region body
PF: predicated region fallthrough
CT: control target
= control target key end

     0   :  { %s5253_s0 = inlined_call_operand.vmem [shape: f32[2,8,32], index: 0, kind: input, shape index: {}]   ;;  %s5254_s1 = inlined_call_operand.vmem [shape: f32[32,96], index: 1, kind: input, shape index: {}]   ;;  %s5255_s2 = inlined_call_operand.vmem [shape: f32[1,96], index: 2, kind: input, shape index: {}]   ;;  %s5256_s3 = inlined_call_operand.vmem [shape: f32[32,32], index: 3, kind: input, shape index: {}]   ;;  %s5257_s4 = inlined_call_operand.vmem [shape: f32[1,32], index: 4, kind: input, shape index: {}]   ;;  %s5258_s5 = inlined_call_operand.vmem [shape: f32[1,32], index: 5, kind: input, shape index: {}]   ;;  %s5259_s6 = inlined_call_operand.vmem [shape: f32[1,32], index: 6, kind: input, shape index: {}]   ;;  %s5260_s7 = inlined_call_operand.vmem [shape: f32[32,2048], index: 7, kind: input, shape index: {}]   ;;  %s5261_s8 = inlined_call_operand.vmem [shape: f32[1,2048], index: 8, kind: input, shape index: {}]   ;;  %s5262_s9 = inlined_call_operand.vmem [shape: f32[2048,32], index: 9, kind: input, shape index: {}]   ;;  %s5263_s10 = inlined_call_operand.vmem [shape: f32[1,32], index: 10, kind: input, shape index: {}]   ;;  %s5264_s11 = inlined_call_operand.vmem [shape: f32[1,32], index: 11, kind: input, shape index: {}]   ;;  %s5265_s12 = inlined_call_operand.vmem [shape: f32[1,32], index: 12, kind: input, shape index: {}]   ;;  %s5266_s13 = inlined_call_operand.hbm [shape: f32[2,8,32], index: 13, kind: output, shape index: {}]  }
   0x1   :  { %5267 = sst [smem:[#allocation5_spill]] %s5253_s0 }
   0x2   :  { %5268 = sst [smem:[#allocation6_spill]] %s5254_s1 }
   0x3   :  { %5269 = sst [smem:[#allocation7_spill]] %s5255_s2 }
   0x4   :  { %5270 = sst [smem:[#allocation8_spill]] %s5256_s3 }
   0x5   :  { %18 = vsyncpa [#allocation3], 0 }
   0x6   :  { %20 = vsyncpa [#allocation3 + $0x1], 0  ;;  %s3943_s25 = smov 0   ;;  %s3945_s26 = smov 0  }
   0x7   :  { %s3947_s27 = smov 0   ;;  %s3949_s28 = smov 0  }
   0x8 LB: > { %s3964_s29 = sadd.s32 4294967295, %s3853_s28   ;;  %s2976_s30 = sadd.s32 4294967294, %s3853_s28   ;;  %s3853_s28 = sphi %s3949_s28, %s5280_s28   ;;  %s3849_s27 = sphi %s3947_s27, %s5279_s27   ;;  %s3845_s26 = sphi %s3945_s26, %s5278_s26   ;;  %s3841_s25 = sphi %s3943_s25, %s5277_s25  }
   0x9   : > { %s3968_s14 = sadd.s32 1, %s3853_s28   ;;  %s311_s15 = sadd.s32 1, %s3849_s27 }
   0xa   : > { %s308_s16 = ssub.s32 %s3853_s28, %s3968_s14  ;;  %p321_p0 = scmp.ne.s32.totalorder %s3849_s27, %s3845_s26 }
   0xb   : > { %p309_p1 = scmp.eq.s32.totalorder %s308_s16, 0  ;;  %p322_p2 = scmp.eq.s32.totalorder %s3964_s29, 1 }
   0xc   : > { %p327_p3 = scmp.ne.s32.totalorder %s3845_s26, %s3841_s25  ;;  %p328_p4 = scmp.eq.s32.totalorder %s2976_s30, 1 }
   0xd   : > { %s3979_s17 = scalar_select %p309_p1, %s3849_s27, %s311_s15  }
   0xe   : > { %p3981_p5 = por %p322_p2, %p321_p0  ;;  %p3985_p6 = por %p328_p4, %p327_p3 }
   0xf   : > { %p2979_p7 = scmp.ge.s32.totalorder %s3853_s28, 1  ;;  %p389_p8 = scmp.lt.s32.totalorder %s3853_s28, 3 }
  0x11   : > { %p390_p9 = pnand %p2979_p7, %p389_p8 }
  0x12   : > { %s5273_s1 = sld [smem:[#allocation6_spill]] (!%p390_p9)  ;;  %v3855_v3 = vmov (!%p390_p9), 0.0|0.0   ;;  %vm3856_vm0 = vmmov (!%p390_p9), 0   ;;  %v3857_v6 = vmov (!%p390_p9), 0.0   ;;  %p432_p10 = scmp.lt.s32.totalorder (!%p390_p9), %s3964_s29, 1  ;;  %vm448_vm1 = vcmask (!%p390_p9), 261120  }
  0x13   : > { %393 = sbr.rel (%p390_p9) target bundleno = 3189 (0xc75), region = 72  ;;  %3383 = vmatprep.subr.bf16.mxu0 (!%p390_p9), %v3855_v3  ;;  %3329 = vmatprep.mubr.msk.f32.mxu0 (!%p390_p9), %vm3856_vm0, %v3857_v6  ;;  %s5274_s0 = sld [smem:[#allocation5_spill]] (!%p390_p9)  ;;  %vm525_vm2 = vcmask (!%p390_p9), 64512   ;;  %vm1195_vm3 = vcmask (!%p390_p9), 130048   ;;  %vm1197_vm4 = vcmask (!%p390_p9), 195584  }
  0x14   : > { %3332 = vmatprep.subr.mxu1 (!%p390_p9), %v3857_v6  ;;  %3334 = vmatprep.mubr.msk.f32.mxu1 (!%p390_p9), %vm3856_vm0, %v3857_v6  ;;  %s5275_s2 = sld [smem:[#allocation7_spill]] (!%p390_p9)  ;;  %s3858_s16 = smov (!%p390_p9), 64  }
  0x15   : > { %s3861_s22 = smov (!%p390_p9), 120   ;;  %s3862_s23 = smov (!%p390_p9), 80  }
  0x16   : > { %s3864_s30 = smov (!%p390_p9), 112   ;;  %s3865_s15 = smov (!%p390_p9), 104  }
  0x17   : > { %s5276_s3 = sld [smem:[#allocation8_spill]] (!%p390_p9) }
  0x18   : > { %v437_v0 = vld [vmem:[%s5273_s1] sm:$0xff] (!%p390_p9)  ;;  %v438_v1 = vld [vmem:[%s5273_s1 + $0x8] sm:$0xff] (!%p390_p9)  ;;  %v439_v2 = vld [vmem:[%s5273_s1 + $0x10] sm:$0xff] (!%p390_p9) }
  0x19   : > { %v3384_v4 = vpack.c.bf16 (!%p390_p9), %v438_v1, %v437_v0  ;;  %v440_v5 = vld [vmem:[%s5273_s1 + $0x18] sm:$0xff] (!%p390_p9)  ;;  %s429_s1 = sand.u32 (!%p390_p9), 1, %s3845_s26  }
  0x1a   : > { %v3387_v7 = vpack.c.bf16 %v440_v5, %v439_v2  ;;  %s433_s20 = scalar_select %p432_p10, %s3964_s29, 1  ;;  %v2982_v9 = vld [vmem:[%s5275_s2] ss:$0 sm:$0xff] }
  0x1b   : > { %3385 = vmatpush3.bf16.msra.mxu0 %v3384_v4  ;;  %s2980_s2 = sshll.u32 %s429_s1, 3 }
  0x1c   : > { %3386 = vmatprep.subr.bf16.mxu0 %v3855_v3  ;;  %s2981_s21 = sshll.u32 %s433_s20, 3  ;;  %s3859_s20 = smov 96  }
  0x1d   : > { %s435_s24 = scalar_lea.vmem %s5274_s0, %s2981_s21  ;;  %s3860_s21 = smov 88  }
  0x1e   : > { %v4015_v8 = vld [vmem:[%s435_s24] sm:$0xff]  ;;  %s3863_s24 = smov 72  }
  0x1f   : > { %3388 = vmatpush3.bf16.msra.mxu0 %v3387_v7 }
  0x20   : > { %3352 = vmatprep.subr.mxu0 %v3857_v6 }
  0x22   : > { %3330 = vmatmul.mubr.msk.f32.vlgmr.msra.gmra.mrb[0].mxu0 %vm448_vm1, %v4015_v8 }
  0x23   : > { %3354 = vmatprep.mubr.msk.f32.mxu0 %vm3856_vm0, %v3857_v6 }
  0xf5   : > { %v518_v10 = vpop.f32.mrb[0].mxu0 }
  0xf6   : > { %v4025_v11 = vadd.f32 %v2982_v9, %v518_v10  ;;  %v3331_v12 = vpop.f32.mrb[1].mxu0  ;;  %v1199_v9 = vld [vmem:[%s5276_s3] sm:$0xff]  ;;  %v1200_v10 = vld [vmem:[%s5276_s3 + $0x8] sm:$0xff] }
  0xf7   : > { %v1201_v12 = vld [vmem:[%s5276_s3 + $0x10] sm:$0xff] }
  0xf8   : > { %611 = vrot.lane.b32.xlu1 %v4025_v11, %s3858_s16  ;;  %523 = vrot.lane.b32.xlu0 %v4025_v11, %s3859_s20  ;;  %s3866_s16 = smov 56   ;;  %s3867_s20 = smov 48  }
  0xfc   : > { %689 = vrot.lane.b32.xlu1 %v4025_v11, %s3860_s21  ;;  %s3868_s21 = smov 40  }
 0x100   : > { %687 = vrot.lane.b32.xlu1 %v4025_v11, %s3861_s22  ;;  %s3869_s22 = smov 8  }
 0x104   : > { %854 = vrot.lane.b32.xlu1 %v4025_v11, %s3862_s23  ;;  %s3870_s23 = smov 16  }
 0x16a   : > { %v612_v13 = vpop.permute.xlu1 %611  ;;  %v524_v14 = vpop.permute.xlu0 %523 }
 0x16b   : > { %3333 = vmatpush3.xpose.msk.msra.mxu1 %vm525_vm2, %v524_v14 }
 0x16c   : > { %3337 = vmatprep.subr.mxu1 %v3857_v6 }
 0x16e   : > { %v690_v15 = vpop.permute.xlu1 %689  ;;  %3335 = vmatmul.mubr.msk.f32.vlgmr.msra.gmra.mrb[0].mxu1 %vm525_vm2, %v4025_v11 }
 0x16f   : > { %3338 = vmatpush3.msra.mxu1 %v612_v13  ;;  %3339 = vmatprep.mubr.msk.f32.mxu1 %vm3856_vm0, %v3857_v6  ;;  %v1202_v13 = vld [vmem:[%s5276_s3 + $0x18] sm:$0xff] }
 0x170   : > { %3342 = vmatprep.subr.mxu1 %v3857_v6  ;;  %v3393_v14 = vpack.c.bf16 %v1202_v13, %v1201_v12  ;;  %v1334_v12 = vld [vmem:[%s5260_s7 + $0xa0] sm:$0xff] }
 0x172   : > { %v688_v16 = vpop.permute.xlu1 %687 }
 0x176   : > { %v855_v17 = vpop.permute.xlu1 %854 }
 0x177   : > { %3353 = vmatpush3.xpose.msk.msra.mxu0 %vm525_vm2, %v855_v17 }
 0x178   : > { %3362 = vmatprep.subr.mxu0 %v3857_v6 }
 0x241   : > { %v596_v18 = vpop.f32.mrb[0].mxu1 }
 0x242   : > { %v3336_v19 = vpop.f32.mrb[1].mxu1  ;;  %v600_v20 = vsel %vm525_vm2, %v596_v18, -inf }
 0x243   : > { %601 = vmax.xlane.f32.xlu0 %v600_v20 }
 0x259   : > { %1019 = vrot.lane.b32.xlu0 %v4025_v11, %s3863_s24  ;;  %s3871_s24 = smov 24  }
 0x2d0   : > { %v602_v21 = vpop.xlane.xlu0 %601 }
 0x2d1   : > { %v603_v22 = vsub.f32 %v596_v18, %v602_v21 }
 0x2d3   : > { %v604_v23 = vmul.f32 1.442695, %v603_v22 }
 0x2d4   : > { %v1020_v28 = vpop.permute.xlu0 %1019 }
 0x2d5   : > { %3771 = vpow2.f32 %v604_v23 }
 0x2df   : > { %v3772_v24 = vpop.eup %3771 }
 0x2e0   : > { %v606_v25 = vsel %vm525_vm2, %v3772_v24, 0.0 }
 0x2e1   : > { %607 = vadd.xlane.f32.xlu1 %v606_v25 }
 0x2f2   : > { %852 = vrot.lane.b32.xlu1 %v4025_v11, %s3864_s30 }
 0x2f6   : > { %1017 = vrot.lane.b32.xlu1 %v4025_v11, %s3865_s15 }
 0x36e   : > { %v608_v26 = vpop.xlane.xlu1 %607 }
 0x36f   : > { %3773 = vrcp.f32 %v608_v26  ;;  %v2996_v26 = vld [vmem:[%s5257_s4] ss:$0 sm:$0xff] }
 0x372   : > { %v853_v27 = vpop.permute.xlu1 %852 }
 0x373   : > { %3355 = vmatmul.mubr.msk.f32.vlgmr.msra.gmra.mrb[2].mxu0 %vm525_vm2, %v853_v27 }
 0x374   : > { %3363 = vmatpush3.xpose.msk.msra.mxu0 %vm525_vm2, %v1020_v28  ;;  %3364 = vmatprep.mubr.msk.f32.mxu0 %vm3856_vm0, %v3857_v6 }
 0x375   : > { %3389 = vmatprep.subr.bf16.mxu0 %v3855_v3 }
 0x376   : > { %v1018_v29 = vpop.permute.xlu1 %1017 }
 0x377   : > { %3365 = vmatmul.mubr.msk.f32.vlgmr.msra.gmra.mrb[4].mxu0 %vm525_vm2, %v1018_v29 }
 0x378   : > { %3380 = vmatprep.mubr.msk.f32.mxu0 %vm3856_vm0, %v3857_v6 }
 0x379   : > { %v3774_v30 = vpop.eup %3773 }
 0x37a   : > { %v610_v31 = vmul.f32 %v3774_v30, %v3772_v24 }
 0x37c   : > { %3340 = vmatmul.mubr.msk.f32.vlgmr.msra.gmra.mrb[2].mxu1 %vm525_vm2, %v610_v31 }
 0x37d   : > { %3343 = vmatpush3.xpose.msk.msra.mxu1 %vm525_vm2, %v690_v15  ;;  %3344 = vmatprep.mubr.msk.f32.mxu1 %vm3856_vm0, %v3857_v6 }
 0x37e   : > { %3347 = vmatprep.subr.mxu1 %v3857_v6 }
 0x380   : > { %3345 = vmatmul.mubr.msk.f32.vlgmr.msra.gmra.mrb[4].mxu1 %vm525_vm2, %v688_v16 }
 0x381   : > { %3349 = vmatprep.mubr.msk.f32.mxu1 %vm3856_vm0, %v3857_v6 }
 0x446   : > { %v926_v32 = vpop.f32.mrb[2].mxu0 }
 0x447   : > { %v3356_v33 = vpop.f32.mrb[3].mxu0  ;;  %v930_v34 = vsel %vm525_vm2, %v926_v32, -inf }
 0x448   : > { %931 = vmax.xlane.f32.xlu0 %v930_v34 }
 0x44a   : > { %v1091_v35 = vpop.f32.mrb[4].mxu0 }
 0x44b   : > { %v3366_v36 = vpop.f32.mrb[5].mxu0  ;;  %v1095_v42 = vsel %vm525_vm2, %v1091_v35, -inf }
 0x44f   : > { %v4063_v37 = vpop.f32.mrb[2].mxu1 }
 0x450   : > { %v3341_v38 = vpop.f32.mrb[3].mxu1 }
 0x451   : > { %v1331_v38 = vld [vmem:[%s5260_s7 + $0x88] sm:$0xff] }
 0x453   : > { %v761_v39 = vpop.f32.mrb[4].mxu1 }
 0x454   : > { %v3346_v40 = vpop.f32.mrb[5].mxu1  ;;  %v765_v41 = vsel %vm525_vm2, %v761_v39, -inf }
 0x455   : > { %766 = vmax.xlane.f32.xlu1 %v765_v41  ;;  %v1333_v40 = vld [vmem:[%s5260_s7 + $0x98] sm:$0xff]  ;;  %v1314_v41 = vld [vmem:[%s5260_s7] sm:$0xff] }
 0x459   : > { %1096 = vmax.xlane.f32.xlu1 %v1095_v42  ;;  %v1330_v42 = vld [vmem:[%s5260_s7 + $0x80] sm:$0xff] }
 0x4d5   : > { %v932_v43 = vpop.xlane.xlu0 %931 }
 0x4d6   : > { %v933_v44 = vsub.f32 %v926_v32, %v932_v43 }
 0x4d8   : > { %v934_v45 = vmul.f32 1.442695, %v933_v44  ;;  %v3397_v44 = vpack.c.bf16 %v1330_v42, %v1314_v41  ;;  %v1371_v41 = vld [vmem:[%s5260_s7 + $0x1c8] sm:$0xff]  ;;  %v1357_v42 = vld [vmem:[%s5260_s7 + $0x158] sm:$0xff] }
 0x4da   : > { %3775 = vpow2.f32 %v934_v45  ;;  %v1316_v45 = vld [vmem:[%s5260_s7 + $0x10] sm:$0xff] }
 0x4e2   : > { %v767_v46 = vpop.xlane.xlu1 %766 }
 0x4e3   : > { %v768_v54 = vsub.f32 %v761_v39, %v767_v46  ;;  %v1332_v46 = vld [vmem:[%s5260_s7 + $0x90] sm:$0xff] }
 0x4e4   : > { %v3776_v47 = vpop.eup %3775 }
 0x4e5   : > { %v936_v48 = vsel %vm525_vm2, %v3776_v47, 0.0  ;;  %v769_v55 = vmul.f32 1.442695, %v768_v54  ;;  %v1362_v54 = vld [vmem:[%s5260_s7 + $0x180] sm:$0xff] }
 0x4e6   : > { %937 = vadd.xlane.f32.xlu1 %v936_v48  ;;  %v1097_v49 = vpop.xlane.xlu1 %1096  ;;  %v1347_v48 = vld [vmem:[%s5260_s7 + $0x108] sm:$0xff] }
 0x4e7   : > { %v1098_v50 = vsub.f32 %v1091_v35, %v1097_v49  ;;  %v1363_v49 = vld [vmem:[%s5260_s7 + $0x188] sm:$0xff] }
 0x4e9   : > { %v1099_v51 = vmul.f32 1.442695, %v1098_v50  ;;  %v1349_v50 = vld [vmem:[%s5260_s7 + $0x118] sm:$0xff] }
 0x4eb   : > { %3777 = vpow2.f32 %v1099_v51  ;;  %v3399_v51 = vpack.c.bf16 %v1363_v49, %v1347_v48 }
 0x4ec   : > { %3779 = vpow2.f32 %v769_v55 }
 0x4f5   : > { %v3778_v52 = vpop.eup %3777 }
 0x4f6   : > { %v1101_v53 = vsel %vm525_vm2, %v3778_v52, 0.0  ;;  %v3780_v56 = vpop.eup %3779 }
 0x4f7   : > { %776 = vrot.lane.b32.xlu1 %v4025_v11, %s3866_s16  ;;  %1102 = vadd.xlane.f32.xlu0 %v1101_v53  ;;  %v771_v57 = vsel %vm525_vm2, %v3780_v56, 0.0  ;;  %v1346_v53 = vld [vmem:[%s5260_s7 + $0x100] sm:$0xff]  ;;  %s3012_s16 = sshll.u32 %s3964_s29, 7  ;;  %s3872_s29 = smov [#allocation2]  }
 0x4f8   : > { %s5210_s0 = scalar_lea.hbm %s5266_s13, %s3012_s16 }
 0x50d   : > { %941 = vrot.lane.b32.xlu0 %v4025_v11, %s3867_s20  ;;  %s431_s20 = scalar_lea.vmem [#allocation2], %s2980_s2  ;;  %s3795_s2 = sshll.u32 %s3872_s29, 4  ;;  %s3796_s2 = int_to_ptr.vmem [resolvable:$false] %s3795_s2 }
 0x50e   : > { %s3797_s3 = scalar_lea.vmem %s3796_s2, 256 }
 0x51b   : > { %772 = vadd.xlane.f32.xlu1 %v771_v57  ;;  %v1348_v57 = vld [vmem:[%s5260_s7 + $0x110] sm:$0xff] }
 0x52c   : > { %1106 = vrot.lane.b32.xlu1 %v4025_v11, %s3868_s21  ;;  %v3390_v11 = vpack.c.bf16 %v1200_v10, %v1199_v9  ;;  %v2999_v10 = vld [vmem:[%s5259_s6] ss:$0 sm:$0xff]  ;;  %s2917_s21 = sshll.u32 %s431_s20, 4  ;;  %s5212_s21 = int_to_ptr.vmem [resolvable:$true] %s2917_s21 }
 0x52d   : > { %s3791_s30 = scalar_lea.vmem %s5212_s21, 128  ;;  %p3798_p0 = scmp.lt.s32.totalorder %s5212_s21, %s3796_s2 }
 0x52e   : > { %3391 = vmatpush3.bf16.msra.mxu0 %v3390_v11  ;;  %v1318_v11 = vld [vmem:[%s5260_s7 + $0x20] sm:$0xff]  ;;  %p3792_p11 = scmp.ne.s32.totalorder %s5212_s21, %s3791_s30  ;;  %p3799_p1 = scmp.lt.s32.totalorder %s3797_s3, %s3791_s30 }
 0x52f   : > { %3392 = vmatprep.subr.bf16.mxu0 %v3855_v3 }
 0x530   : > { %p3793_p12 = pnand %p3792_p11, %p3981_p5  ;;  %p3800_p2 = por %p3799_p1, %p3798_p0 }
 0x532   : > { %3394 = vmatpush3.bf16.msra.mxu0 %v3393_v14  ;;  %v1320_v14 = vld [vmem:[%s5260_s7 + $0x30] sm:$0xff]  ;;  %p3794_p13 = pneg %p3793_p12 }
 0x534   : > { %p3801_p3 = pnand %p3800_p2, %p3794_p13 }
 0x573   : > { %v938_v58 = vpop.xlane.xlu1 %937 }
 0x577   : > { %v777_v59 = vpop.permute.xlu1 %776 }
 0x578   : > { %3348 = vmatpush3.msra.mxu1 %v777_v59 }
 0x579   : > { %3357 = vmatprep.subr.mxu1 %v3857_v6 }
 0x584   : > { %v1103_v61 = vpop.xlane.xlu0 %1102 }
 0x588   : > { %v942_v1 = vpop.permute.xlu0 %941 }
 0x5a8   : > { %v773_v60 = vpop.xlane.xlu1 %772 }
 0x5a9   : > { %3781 = vrcp.f32 %v773_v60  ;;  %v1319_v60 = vld [vmem:[%s5260_s7 + $0x28] sm:$0xff] }
 0x5aa   : > { %3783 = vrcp.f32 %v938_v58  ;;  %v1364_v58 = vld [vmem:[%s5260_s7 + $0x190] sm:$0xff] }
 0x5ab   : > { %3785 = vrcp.f32 %v1103_v61  ;;  %v3409_v59 = vpack.c.bf16 %v1364_v58, %v1348_v57  ;;  %v1335_v61 = vld [vmem:[%s5260_s7 + $0xa8] sm:$0xff]  ;;  %v1326_v58 = vld [vmem:[%s5260_s7 + $0x60] sm:$0xff] }
 0x5ac   : > { %v1107_v5 = vpop.permute.xlu1 %1106 }
 0x5b3   : > { %v3782_v62 = vpop.eup %3781 }
 0x5b4   : > { %v775_v63 = vmul.f32 %v3782_v62, %v3780_v56  ;;  %v3784_v0 = vpop.eup %3783  ;;  %v3401_v56 = vpack.c.bf16 %v1362_v54, %v1346_v53  ;;  %v1321_v62 = vld [vmem:[%s5260_s7 + $0x38] sm:$0xff]  ;;  %v1343_v53 = vld [vmem:[%s5260_s7 + $0xe8] sm:$0xff] }
 0x5b5   : > { %v940_v2 = vmul.f32 %v3784_v0, %v3776_v47  ;;  %v3786_v4 = vpop.eup %3785  ;;  %v3405_v47 = vpack.c.bf16 %v1332_v46, %v1316_v45  ;;  %v1337_v0 = vld [vmem:[%s5260_s7 + $0xb8] sm:$0xff]  ;;  %v1354_v46 = vld [vmem:[%s5260_s7 + $0x140] sm:$0xff] }
 0x5b6   : > { %3350 = vmatmul.mubr.msk.f32.vlgmr.msra.gmra.mrb[6].mxu1 %vm525_vm2, %v775_v63  ;;  %v1105_v7 = vmul.f32 %v3786_v4, %v3778_v52  ;;  %v1365_v52 = vld [vmem:[%s5260_s7 + $0x198] sm:$0xff]  ;;  %v3411_v63 = vpack.c.bf16 %v1335_v61, %v1319_v60 }
 0x5b7   : > { %3358 = vmatpush3.msra.mxu1 %v942_v1  ;;  %3359 = vmatprep.mubr.msk.f32.mxu1 %vm3856_vm0, %v3857_v6  ;;  %v3407_v55 = vpack.c.bf16 %v1365_v52, %v1349_v50  ;;  %v3419_v1 = vpack.c.bf16 %v1337_v0, %v1321_v62  ;;  %v1356_v50 = vld [vmem:[%s5260_s7 + $0x150] sm:$0xff]  ;;  %v1327_v52 = vld [vmem:[%s5260_s7 + $0x68] sm:$0xff]  ;;  %v1329_v54 = vld [vmem:[%s5260_s7 + $0x78] sm:$0xff] }
 0x5b8   : > { %3367 = vmatprep.subr.mxu1 %v3857_v6  ;;  %v3443_v60 = vpack.c.bf16 %v1343_v53, %v1327_v52  ;;  %v1328_v62 = vld [vmem:[%s5260_s7 + $0x70] sm:$0xff]  ;;  %v1359_v0 = vld [vmem:[%s5260_s7 + $0x168] sm:$0xff]  ;;  %v2104_v52 = vld [vmem:[%s5262_s9 + $0x1b8] sm:$0xff] }
 0x5ba   : > { %3360 = vmatmul.mubr.msk.f32.vlgmr.msra.gmra.mrb[8].mxu1 %vm525_vm2, %v940_v2 }
 0x5bb   : > { %3368 = vmatpush3.msra.mxu1 %v1107_v5  ;;  %3369 = vmatprep.mubr.msk.f32.mxu1 %vm3856_vm0, %v3857_v6 }
 0x5be   : > { %3370 = vmatmul.mubr.msk.f32.vlgmr.msra.gmra.mrb[10].mxu1 %vm525_vm2, %v1105_v7  ;;  %v2998_v7 = vld [vmem:[%s5258_s5] ss:$0 sm:$0xff] }
 0x5bf   : > { %1529 = vmatprep.mubr.f32.mxu1 %v3857_v6 }
 0x689   : > { %v848_v15 = vpop.f32.mrb[6].mxu1 }
 0x68a   : > { %1183 = vrot.lane.b32.xlu1 %v848_v15, %s3869_s22  ;;  %v3351_v16 = vpop.f32.mrb[7].mxu1  ;;  %v1336_v15 = vld [vmem:[%s5260_s7 + $0xb0] sm:$0xff] }
 0x68b   : > { %v1351_v16 = vld [vmem:[%s5260_s7 + $0x128] sm:$0xff] }
 0x68d   : > { %v1013_v17 = vpop.f32.mrb[8].mxu1 }
 0x68e   : > { %1187 = vrot.lane.b32.xlu0 %v1013_v17, %s3870_s23  ;;  %v3361_v18 = vpop.f32.mrb[9].mxu1  ;;  %v1367_v17 = vld [vmem:[%s5260_s7 + $0x1a8] sm:$0xff] }
 0x68f   : > { %v1353_v18 = vld [vmem:[%s5260_s7 + $0x138] sm:$0xff] }
 0x691   : > { %v1178_v19 = vpop.f32.mrb[10].mxu1 }
 0x692   : > { %1191 = vrot.lane.b32.xlu1 %v1178_v19, %s3871_s24  ;;  %v3371_v3 = vpop.f32.mrb[11].mxu1  ;;  %v1369_v19 = vld [vmem:[%s5260_s7 + $0x1b8] sm:$0xff]  ;;  %s2904_s24 = scalar_lea.sflag [#allocation3], %s429_s1 }
 0x6fc   : > { %v1184_v20 = vpop.permute.xlu1 %1183 }
 0x6fd   : > { %v1194_v22 = vsel %vm525_vm2, %v4063_v37, %v1184_v20  ;;  %v1315_v37 = vld [vmem:[%s5260_s7 + $0x8] sm:$0xff]  ;;  %v3413_v20 = vpack.c.bf16 %v1334_v12, %v1318_v11 }
 0x6fe   : > { %v3395_v39 = vpack.c.bf16 %v1331_v38, %v1315_v37 }
 0x700   : > { %v1188_v21 = vpop.permute.xlu0 %1187  ;;  %3396 = vmatprep.subr.bf16.mxu1 %v3395_v39  ;;  %v1340_v39 = vld [vmem:[%s5260_s7 + $0xd0] sm:$0xff] }
 0x701   : > { %v1196_v23 = vsel %vm1195_vm3, %v1194_v22, %v1188_v21  ;;  %3398 = vmatpush1.bf16.msra.mxu1 %v3397_v44  ;;  %v3421_v21 = vpack.c.bf16 %v1336_v15, %v1320_v14  ;;  %v1350_v22 = vld [vmem:[%s5260_s7 + $0x120] sm:$0xff]  ;;  %v1376_v14 = vld [vmem:[%s5260_s7 + $0x1f0] sm:$0xff] }
 0x702   : > { %3400 = vmatprep.subr.bf16.mxu1 %v3399_v51  ;;  %v1372_v51 = vld [vmem:[%s5260_s7 + $0x1d0] sm:$0xff]  ;;  %v2065_v15 = vld [vmem:[%s5262_s9 + $0x80] sm:$0xff] }
 0x703   : > { %v3441_v57 = vpack.c.bf16 %v1372_v51, %v1356_v50  ;;  %v2072_v50 = vld [vmem:[%s5262_s9 + $0xb8] sm:$0xff]  ;;  %v2103_v51 = vld [vmem:[%s5262_s9 + $0x1b0] sm:$0xff] }
 0x704   : > { %v1192_v24 = vpop.permute.xlu1 %1191 }
 0x705   : > { %v1198_v25 = vsel %vm1197_vm4, %v1196_v23, %v1192_v24  ;;  %3402 = vmatpush1.bf16.msra.mxu1 %v3401_v56  ;;  %v1366_v23 = vld [vmem:[%s5260_s7 + $0x1a0] sm:$0xff] }
 0x706   : > { %3381 = vmatmul.mubr.msk.f32.vlgmr.msra.gmra.mrb[6].mxu0 %vm448_vm1, %v1198_v25  ;;  %3412 = vmatprep.subr.bf16.mxu1 %v3411_v63  ;;  %v3415_v25 = vpack.c.bf16 %v1367_v17, %v1351_v16  ;;  %v1344_v63 = vld [vmem:[%s5260_s7 + $0xf0] sm:$0xff]  ;;  %v2066_v16 = vld [vmem:[%s5262_s9 + $0x88] sm:$0xff]  ;;  %v2097_v17 = vld [vmem:[%s5262_s9 + $0x180] sm:$0xff] }
 0x707   : > { %1600 = vmatprep.mubr.f32.mxu0 %v3857_v6 }
 0x7d9   : > { %v1279_v27 = vpop.f32.mrb[6].mxu0 }
 0x7da   : > { %v1280_v28 = vadd.f32 %v2996_v26, %v1279_v27  ;;  %v3382_v29 = vpop.f32.mrb[7].mxu0  ;;  %v3423_v26 = vpack.c.bf16 %v1369_v19, %v1353_v18  ;;  %v1352_v27 = vld [vmem:[%s5260_s7 + $0x130] sm:$0xff]  ;;  %v2098_v18 = vld [vmem:[%s5262_s9 + $0x188] sm:$0xff] }
 0x7db   : > { %v1323_v29 = vld [vmem:[%s5260_s7 + $0x48] sm:$0xff] }
 0x7dc   : > { %v1283_v30 = vadd.f32 %v1280_v28, %v4015_v8  ;;  %v1317_v8 = vld [vmem:[%s5260_s7 + $0x18] sm:$0xff]  ;;  %v1368_v28 = vld [vmem:[%s5260_s7 + $0x1b0] sm:$0xff] }
 0x7dd   : > { %v3403_v43 = vpack.c.bf16 %v1333_v40, %v1317_v8  ;;  %v1324_v8 = vld [vmem:[%s5260_s7 + $0x50] sm:$0xff]  ;;  %v1355_v40 = vld [vmem:[%s5260_s7 + $0x148] sm:$0xff] }
 0x7de   : > { %v1286_v31 = vsel %vm448_vm1, %v1283_v30, 0.0  ;;  %v3437_v45 = vpack.c.bf16 %v1340_v39, %v1324_v8  ;;  %v3431_v48 = vpack.c.bf16 %v1371_v41, %v1355_v40  ;;  %v2070_v8 = vld [vmem:[%s5262_s9 + $0xa8] sm:$0xff]  ;;  %v2101_v39 = vld [vmem:[%s5262_s9 + $0x1a0] sm:$0xff] }
 0x7df   : > { %1287 = vadd.xlane.f32.xlu0 %v1286_v31  ;;  %3404 = vmatprep.subr.bf16.mxu0 %v3403_v43  ;;  %v1325_v31 = vld [vmem:[%s5260_s7 + $0x58] sm:$0xff]  ;;  %v2102_v40 = vld [vmem:[%s5262_s9 + $0x1a8] sm:$0xff] }
 0x7e0   : > { %3406 = vmatpush1.bf16.msra.mxu0 %v3405_v47  ;;  %v1373_v43 = vld [vmem:[%s5260_s7 + $0x1d8] sm:$0xff]  ;;  %v1370_v47 = vld [vmem:[%s5260_s7 + $0x1c0] sm:$0xff] }
 0x7e1   : > { %3408 = vmatprep.subr.bf16.mxu0 %v3407_v55  ;;  %v3439_v49 = vpack.c.bf16 %v1373_v43, %v1357_v42  ;;  %v1345_v55 = vld [vmem:[%s5260_s7 + $0xf8] sm:$0xff]  ;;  %v3433_v56 = vpack.c.bf16 %v1370_v47, %v1354_v46  ;;  %v2053_v43 = vld [vmem:[%s5262_s9 + $0x20] sm:$0xff]  ;;  %v3499_v46 = vpack.c.bf16 %v2102_v40, %v2101_v39 }
 0x7e2   : > { %v3451_v61 = vpack.c.bf16 %v1345_v55, %v1329_v54  ;;  %v2085_v47 = vld [vmem:[%s5262_s9 + $0x120] sm:$0xff]  ;;  %v2055_v55 = vld [vmem:[%s5262_s9 + $0x30] sm:$0xff]  ;;  %v2112_v40 = vld [vmem:[%s5262_s9 + $0x1f8] sm:$0xff] }
 0x7e4   : > { %3410 = vmatpush1.bf16.msra.mxu0 %v3409_v59  ;;  %v1342_v59 = vld [vmem:[%s5260_s7 + $0xe0] sm:$0xff] }
 0x7e5   : > { %3420 = vmatprep.subr.bf16.mxu0 %v3419_v1  ;;  %v1375_v1 = vld [vmem:[%s5260_s7 + $0x1e8] sm:$0xff] }
 0x7e6   : > { %v3447_v11 = vpack.c.bf16 %v1375_v1, %v1359_v0  ;;  %v2106_v0 = vld [vmem:[%s5262_s9 + $0x1c8] sm:$0xff] }
 0x86c   : > { %v1288_v32 = vpop.xlane.xlu0 %1287 }
 0x86d   : > { %v1290_v33 = vmul.f32 0.03125, %v1288_v32  ;;  %v1341_v32 = vld [vmem:[%s5260_s7 + $0xd8] sm:$0xff] }
 0x86e   : > { %v3435_v38 = vpack.c.bf16 %v1341_v32, %v1325_v31 }
 0x86f   : > { %v1291_v34 = vsub.f32 %v1283_v30, %v1290_v33  ;;  %v1339_v30 = vld [vmem:[%s5260_s7 + $0xc8] sm:$0xff]  ;;  %v3417_v33 = vpack.c.bf16 %v1366_v23, %v1350_v22  ;;  %v3459_v22 = vpack.c.bf16 %v2066_v16, %v2065_v15  ;;  %v3491_v23 = vpack.c.bf16 %v2098_v18, %v2097_v17  ;;  %v2108_v15 = vld [vmem:[%s5262_s9 + $0x1d8] sm:$0xff]  ;;  %v2059_v18 = vld [vmem:[%s5262_s9 + $0x50] sm:$0xff] }
 0x870   : > { %v3427_v37 = vpack.c.bf16 %v1339_v30, %v1323_v29  ;;  %v2099_v29 = vld [vmem:[%s5262_s9 + $0x190] sm:$0xff]  ;;  %v2100_v30 = vld [vmem:[%s5262_s9 + $0x198] sm:$0xff] }
 0x871   : > { %v1292_v35 = vmul.f32 %v1291_v34, %v1291_v34 }
 0x873   : > { %v1293_v36 = vsel %vm448_vm1, %v1292_v35, 0.0  ;;  %v1322_v35 = vld [vmem:[%s5260_s7 + $0x40] sm:$0xff] }
 0x874   : > { %1294 = vadd.xlane.f32.xlu1 %v1293_v36  ;;  %v1338_v36 = vld [vmem:[%s5260_s7 + $0xc0] sm:$0xff] }
 0x875   : > { %v3429_v44 = vpack.c.bf16 %v1338_v36, %v1322_v35  ;;  %v3495_v35 = vpack.c.bf16 %v2100_v30, %v2099_v29  ;;  %v2083_v36 = vld [vmem:[%s5262_s9 + $0x110] sm:$0xff]  ;;  %v2061_v30 = vld [vmem:[%s5262_s9 + $0x60] sm:$0xff] }
 0x901   : > { %v1295_v2 = vpop.xlane.xlu1 %1294 }
 0x902   : > { %v1296_v4 = vmul.f32 0.03125, %v1295_v2  ;;  %v1361_v2 = vld [vmem:[%s5260_s7 + $0x178] sm:$0xff] }
 0x904   : > { %v1297_v5 = vadd.f32 1e-06, %v1296_v4  ;;  %v1377_v4 = vld [vmem:[%s5260_s7 + $0x1f8] sm:$0xff] }
 0x905   : > { %v3455_v12 = vpack.c.bf16 %v1377_v4, %v1361_v2  ;;  %v2057_v4 = vld [vmem:[%s5262_s9 + $0x40] sm:$0xff] }
 0x906   : > { %3787 = vrsqrt.f32 %v1297_v5  ;;  %v3445_v5 = vpack.c.bf16 %v1342_v59, %v1326_v58  ;;  %v3503_v58 = vpack.c.bf16 %v2104_v52, %v2103_v51  ;;  %v2087_v59 = vld [vmem:[%s5262_s9 + $0x130] sm:$0xff]  ;;  %v2162_v52 = vld [vmem:[%s5262_s9 + $0x388] sm:$0xff] }
 0x910   : > { %v3788_v9 = vpop.eup %3787 }
 0x911   : > { %v1299_v13 = vmul.f32 %v3788_v9, %v1291_v34  ;;  %v3425_v34 = vpack.c.bf16 %v1368_v28, %v1352_v27  ;;  %v1358_v9 = vld [vmem:[%s5260_s7 + $0x160] sm:$0xff]  ;;  %v2067_v27 = vld [vmem:[%s5262_s9 + $0x90] sm:$0xff]  ;;  %v2068_v28 = vld [vmem:[%s5262_s9 + $0x98] sm:$0xff] }
 0x913   : > { %v1306_v3 = vmul.f32 %v2998_v7, %v1299_v13  ;;  %v3453_v7 = vpack.c.bf16 %v1344_v63, %v1328_v62  ;;  %v1360_v13 = vld [vmem:[%s5260_s7 + $0x170] sm:$0xff]  ;;  %v2074_v62 = vld [vmem:[%s5262_s9 + $0xc8] sm:$0xff]  ;;  %v2105_v63 = vld [vmem:[%s5262_s9 + $0x1c0] sm:$0xff] }
 0x915   : > { %v4202_v24 = vadd.f32 %v2999_v10, %v1306_v3  ;;  %v1374_v10 = vld [vmem:[%s5260_s7 + $0x1e0] sm:$0xff]  ;;  %v3457_v3 = vpack.c.bf16 %v1376_v14, %v1360_v13  ;;  %v2076_v13 = vld [vmem:[%s5262_s9 + $0xd8] sm:$0xff]  ;;  %v2107_v14 = vld [vmem:[%s5262_s9 + $0x1d0] sm:$0xff] }
 0x916   : > { %v3449_v19 = vpack.c.bf16 %v1374_v10, %v1358_v9  ;;  %v3507_v9 = vpack.c.bf16 %v2106_v0, %v2105_v63  ;;  %v2089_v10 = vld [vmem:[%s5262_s9 + $0x140] sm:$0xff] }
 0x917   : > { %3000 = vmatmul.mubr.msk.f32.vlgmr.msra.gmra.mrb[12].mxu1 %vm448_vm1, %v4202_v24  ;;  %3001 = vmatmul.mubr.msk.f32.vlgmr.msra.gmra.mrb[8].mxu0 %vm448_vm1, %v4202_v24 }
 0x918   : > { %3414 = vmatpush1.bf16.msra.mxu1 %v3413_v20  ;;  %3422 = vmatpush1.bf16.msra.mxu0 %v3421_v21  ;;  %v2049_v20 = vld [vmem:[%s5262_s9] sm:$0xff]  ;;  %v2050_v21 = vld [vmem:[%s5262_s9 + $0x8] sm:$0xff] }
 0x919   : > { %3416 = vmatprep.subr.bf16.mxu1 %v3415_v25  ;;  %3424 = vmatprep.subr.bf16.mxu0 %v3423_v26  ;;  %v2081_v25 = vld [vmem:[%s5262_s9 + $0x100] sm:$0xff]  ;;  %v2082_v26 = vld [vmem:[%s5262_s9 + $0x108] sm:$0xff]  ;;  %v3461_v31 = vpack.c.bf16 %v2050_v21, %v2049_v20  ;;  %v3511_v20 = vpack.c.bf16 %v2108_v15, %v2107_v14  ;;  %v2091_v21 = vld [vmem:[%s5262_s9 + $0x150] sm:$0xff] }
 0x91a   : > { %1671 = vmatprep.mubr.f32.mxu1 %v3857_v6  ;;  %1742 = vmatprep.mubr.f32.mxu0 %v3857_v6  ;;  %v3493_v32 = vpack.c.bf16 %v2082_v26, %v2081_v25  ;;  %v2078_v25 = vld [vmem:[%s5262_s9 + $0xe8] sm:$0xff]  ;;  %v2109_v26 = vld [vmem:[%s5262_s9 + $0x1e0] sm:$0xff] }
 0x91b   : > { %v2145_v15 = vld [vmem:[%s5262_s9 + $0x300] sm:$0xff] }
 0x91c   : > { %3418 = vmatpush1.bf16.msra.mxu1 %v3417_v33  ;;  %3426 = vmatpush1.bf16.msra.mxu0 %v3425_v34  ;;  %v2052_v33 = vld [vmem:[%s5262_s9 + $0x18] sm:$0xff]  ;;  %v3463_v34 = vpack.c.bf16 %v2068_v28, %v2067_v27  ;;  %v2110_v27 = vld [vmem:[%s5262_s9 + $0x1e8] sm:$0xff] }
 0x91d   : > { %3428 = vmatprep.subr.bf16.mxu1 %v3427_v37  ;;  %3436 = vmatprep.subr.bf16.mxu0 %v3435_v38  ;;  %v2084_v37 = vld [vmem:[%s5262_s9 + $0x118] sm:$0xff]  ;;  %v2069_v38 = vld [vmem:[%s5262_s9 + $0xa0] sm:$0xff] }
 0x91e   : > { %v3497_v42 = vpack.c.bf16 %v2084_v37, %v2083_v36  ;;  %v2079_v37 = vld [vmem:[%s5262_s9 + $0xf0] sm:$0xff] }
 0x91f   : > { %3002 = vmatmul.mubr.msk.f32.vlgmr.msra.gmra.mrb[14].mxu1 %vm448_vm1, %v4202_v24  ;;  %3003 = vmatmul.mubr.msk.f32.vlgmr.msra.gmra.mrb[10].mxu0 %vm448_vm1, %v4202_v24 }
 0x920   : > { %3430 = vmatpush1.bf16.msra.mxu1 %v3429_v44  ;;  %3438 = vmatpush1.bf16.msra.mxu0 %v3437_v45  ;;  %v2054_v44 = vld [vmem:[%s5262_s9 + $0x28] sm:$0xff]  ;;  %v3467_v45 = vpack.c.bf16 %v2070_v8, %v2069_v38  ;;  %v2080_v38 = vld [vmem:[%s5262_s9 + $0xf8] sm:$0xff]  ;;  %v2111_v8 = vld [vmem:[%s5262_s9 + $0x1f0] sm:$0xff] }
 0x921   : > { %3432 = vmatprep.subr.bf16.mxu1 %v3431_v48  ;;  %3440 = vmatprep.subr.bf16.mxu0 %v3439_v49  ;;  %v2086_v48 = vld [vmem:[%s5262_s9 + $0x128] sm:$0xff]  ;;  %v2071_v49 = vld [vmem:[%s5262_s9 + $0xb0] sm:$0xff]  ;;  %v3469_v53 = vpack.c.bf16 %v2054_v44, %v2053_v43  ;;  %v3487_v39 = vpack.c.bf16 %v2080_v38, %v2079_v37  ;;  %v3519_v43 = vpack.c.bf16 %v2112_v40, %v2111_v8 }
 0x922   : > { %1813 = vmatprep.mubr.f32.mxu1 %v3857_v6  ;;  %1884 = vmatprep.mubr.f32.mxu0 %v3857_v6  ;;  %v3501_v54 = vpack.c.bf16 %v2086_v48, %v2085_v47  ;;  %v2129_v48 = vld [vmem:[%s5262_s9 + $0x280] sm:$0xff]  ;;  %v2134_v8 = vld [vmem:[%s5262_s9 + $0x2a8] sm:$0xff] }
 0x923   : > { %v2166_v40 = vld [vmem:[%s5262_s9 + $0x3a8] sm:$0xff] }
 0x924   : > { %3434 = vmatpush1.bf16.msra.mxu1 %v3433_v56  ;;  %3442 = vmatpush1.bf16.msra.mxu0 %v3441_v57  ;;  %v2056_v56 = vld [vmem:[%s5262_s9 + $0x38] sm:$0xff]  ;;  %v3471_v57 = vpack.c.bf16 %v2072_v50, %v2071_v49  ;;  %v2130_v49 = vld [vmem:[%s5262_s9 + $0x288] sm:$0xff]  ;;  %v2161_v50 = vld [vmem:[%s5262_s9 + $0x380] sm:$0xff] }
 0x925   : > { %3444 = vmatprep.subr.bf16.mxu1 %v3443_v60  ;;  %3452 = vmatprep.subr.bf16.mxu0 %v3451_v61  ;;  %v2088_v60 = vld [vmem:[%s5262_s9 + $0x138] sm:$0xff]  ;;  %v2073_v61 = vld [vmem:[%s5262_s9 + $0xc0] sm:$0xff]  ;;  %v3473_v1 = vpack.c.bf16 %v2056_v56, %v2055_v55  ;;  %v3523_v51 = vpack.c.bf16 %v2130_v49, %v2129_v48 }
 0x926   : > { %v3505_v2 = vpack.c.bf16 %v2088_v60, %v2087_v59 }
 0x927   : > { %3004 = vmatmul.mubr.msk.f32.vlgmr.msra.gmra.mrb[16].mxu1 %vm448_vm1, %v4202_v24  ;;  %3005 = vmatmul.mubr.msk.f32.vlgmr.msra.gmra.mrb[12].mxu0 %vm448_vm1, %v4202_v24 }
 0x928   : > { %3446 = vmatpush1.bf16.msra.mxu1 %v3445_v5  ;;  %3454 = vmatpush1.bf16.msra.mxu0 %v3453_v7  ;;  %v2058_v5 = vld [vmem:[%s5262_s9 + $0x48] sm:$0xff]  ;;  %v3475_v7 = vpack.c.bf16 %v2074_v62, %v2073_v61  ;;  %v4550_v61 = vld [vmem:[%s5261_s8] sm:$0xff] }
 0x929   : > { %3448 = vmatprep.subr.bf16.mxu1 %v3447_v11  ;;  %3456 = vmatprep.subr.bf16.mxu0 %v3455_v12  ;;  %v2090_v11 = vld [vmem:[%s5262_s9 + $0x148] sm:$0xff]  ;;  %v2075_v12 = vld [vmem:[%s5262_s9 + $0xd0] sm:$0xff]  ;;  %v3477_v16 = vpack.c.bf16 %v2058_v5, %v2057_v4 }
 0x92a   : > { %1955 = vmatprep.mubr.f32.mxu1 %v3857_v6  ;;  %2026 = vmatprep.mubr.f32.mxu0 %v3857_v6  ;;  %v2051_v6 = vld [vmem:[%s5262_s9 + $0x10] sm:$0xff]  ;;  %v3509_v17 = vpack.c.bf16 %v2090_v11, %v2089_v10  ;;  %v2114_v10 = vld [vmem:[%s5262_s9 + $0x208] sm:$0xff] }
 0x92b   : > { %v3465_v41 = vpack.c.bf16 %v2052_v33, %v2051_v6  ;;  %v2062_v6 = vld [vmem:[%s5262_s9 + $0x68] sm:$0xff]  ;;  %v2093_v33 = vld [vmem:[%s5262_s9 + $0x160] sm:$0xff] }
 0x92c   : > { %3450 = vmatpush1.bf16.msra.mxu1 %v3449_v19  ;;  %3458 = vmatpush1.bf16.msra.mxu0 %v3457_v3  ;;  %v2060_v19 = vld [vmem:[%s5262_s9 + $0x58] sm:$0xff]  ;;  %v3479_v3 = vpack.c.bf16 %v2076_v13, %v2075_v12 }
 0x92d   : > { %3460 = vmatprep.subr.bf16.mxu1 %v3459_v22  ;;  %3492 = vmatprep.subr.bf16.mxu0 %v3491_v23  ;;  %v2092_v22 = vld [vmem:[%s5262_s9 + $0x158] sm:$0xff]  ;;  %v2077_v23 = vld [vmem:[%s5262_s9 + $0xe0] sm:$0xff]  ;;  %v3481_v28 = vpack.c.bf16 %v2060_v19, %v2059_v18 }
 0x92e   : > { %v3513_v29 = vpack.c.bf16 %v2092_v22, %v2091_v21  ;;  %v2132_v21 = vld [vmem:[%s5262_s9 + $0x298] sm:$0xff]  ;;  %v2163_v22 = vld [vmem:[%s5262_s9 + $0x390] sm:$0xff] }
 0x92f   : > { %3006 = vmatmul.mubr.msk.f32.vlgmr.msra.gmra.mrb[18].mxu1 %vm448_vm1, %v4202_v24  ;;  %3007 = vmatmul.mubr.msk.f32.vlgmr.msra.gmra.mrb[14].mxu0 %vm448_vm1, %v4202_v24 }
 0x930   : > { %3462 = vmatpush3.bf16.msra.mxu1 %v3461_v31  ;;  %3494 = vmatpush3.bf16.msra.mxu0 %v3493_v32  ;;  %v3483_v31 = vpack.c.bf16 %v2078_v25, %v2077_v23  ;;  %v3515_v32 = vpack.c.bf16 %v2110_v27, %v2109_v26  ;;  %v2164_v23 = vld [vmem:[%s5262_s9 + $0x398] sm:$0xff] }
 0x931   : > { %3464 = vmatprep.subr.bf16.mxu1 %v3463_v34  ;;  %3496 = vmatprep.subr.bf16.mxu0 %v3495_v35  ;;  %v2094_v34 = vld [vmem:[%s5262_s9 + $0x168] sm:$0xff]  ;;  %v3485_v35 = vpack.c.bf16 %v2062_v6, %v2061_v30  ;;  %v2116_v30 = vld [vmem:[%s5262_s9 + $0x218] sm:$0xff] }
 0x932   : > { %v3517_v36 = vpack.c.bf16 %v2094_v34, %v2093_v33  ;;  %v3559_v33 = vpack.c.bf16 %v2164_v23, %v2163_v22  ;;  %v2147_v34 = vld [vmem:[%s5262_s9 + $0x310] sm:$0xff] }
 0x934   : > { %3466 = vmatpush3.bf16.msra.mxu1 %v3465_v41  ;;  %3498 = vmatpush3.bf16.msra.mxu0 %v3497_v42  ;;  %v2063_v41 = vld [vmem:[%s5262_s9 + $0x70] sm:$0xff]  ;;  %v2064_v42 = vld [vmem:[%s5262_s9 + $0x78] sm:$0xff] }
 0x935   : > { %3468 = vmatprep.subr.bf16.mxu1 %v3467_v45  ;;  %3500 = vmatprep.subr.bf16.mxu0 %v3499_v46  ;;  %v3489_v44 = vpack.c.bf16 %v2064_v42, %v2063_v41  ;;  %v2095_v45 = vld [vmem:[%s5262_s9 + $0x170] sm:$0xff]  ;;  %v2096_v46 = vld [vmem:[%s5262_s9 + $0x178] sm:$0xff] }
 0x936   : > { %v3521_v47 = vpack.c.bf16 %v2096_v46, %v2095_v45  ;;  %v2117_v45 = vld [vmem:[%s5262_s9 + $0x220] sm:$0xff]  ;;  %v2118_v46 = vld [vmem:[%s5262_s9 + $0x228] sm:$0xff] }
 0x938   : > { %3470 = vmatpush3.bf16.msra.mxu1 %v3469_v53  ;;  %3502 = vmatpush3.bf16.msra.mxu0 %v3501_v54  ;;  %v3555_v53 = vpack.c.bf16 %v2162_v52, %v2161_v50  ;;  %v1382_v54 = vlaneseq  ;;  %v2150_v52 = vld [vmem:[%s5262_s9 + $0x328] sm:$0xff] }
 0x939   : > { %3472 = vmatprep.subr.bf16.mxu1 %v3471_v57  ;;  %3504 = vmatprep.subr.bf16.mxu0 %v3503_v58  ;;  %v4538_v57 = vld [vmem:[%s5261_s8 + $0x8] sm:$0xff] }
 0x93a   : > { %v4532_v55 = vshrl.u32 %v1382_v54, 7 }
 0x93c   : > { %3474 = vmatpush3.bf16.msra.mxu1 %v3473_v1  ;;  %3506 = vmatpush3.bf16.msra.mxu0 %v3505_v2  ;;  %v1408_v56 = vsub.s32 6, %v4532_v55  ;;  %v1384_v59 = vsub.s32 0, %v4532_v55  ;;  %v1392_v60 = vsub.s32 2, %v4532_v55  ;;  %v1388_v62 = vsub.s32 1, %v4532_v55 }
 0x93d   : > { %3476 = vmatprep.subr.bf16.mxu1 %v3475_v7  ;;  %3508 = vmatprep.subr.bf16.mxu0 %v3507_v9  ;;  %v1396_v63 = vsub.s32 3, %v4532_v55  ;;  %v2113_v9 = vld [vmem:[%s5262_s9 + $0x200] sm:$0xff] }
 0x93e   : > { %v4543_v58 = vrot.slane %v4538_v57, %v1408_v56  ;;  %v1385_v0 = vrot.slane %v4550_v61, %v1384_v59  ;;  %v1393_v1 = vrot.slane %v4550_v61, %v1392_v60  ;;  %v1389_v2 = vrot.slane %v4550_v61, %v1388_v62 }
 0x93f   : > { %v1397_v4 = vrot.slane %v4550_v61, %v1396_v63  ;;  %v3525_v27 = vpack.c.bf16 %v2114_v10, %v2113_v9  ;;  %v1417_v10 = vrot.slane %v4538_v57, %v1384_v59 }
 0x940   : > { %3478 = vmatpush3.bf16.msra.mxu1 %v3477_v16  ;;  %3510 = vmatpush3.bf16.msra.mxu0 %v3509_v17  ;;  %v2146_v16 = vld [vmem:[%s5262_s9 + $0x308] sm:$0xff]  ;;  %v2131_v17 = vld [vmem:[%s5262_s9 + $0x290] sm:$0xff] }
 0x941   : > { %3480 = vmatprep.subr.bf16.mxu1 %v3479_v3  ;;  %3512 = vmatprep.subr.bf16.mxu0 %v3511_v20  ;;  %v1404_v3 = vsub.s32 5, %v4532_v55  ;;  %v1412_v20 = vsub.s32 7, %v4532_v55  ;;  %v3527_v6 = vpack.c.bf16 %v2132_v21, %v2131_v17  ;;  %v2152_v17 = vld [vmem:[%s5262_s9 + $0x338] sm:$0xff]  ;;  %v2170_v21 = vld [vmem:[%s5262_s9 + $0x3c8] sm:$0xff] }
 0x943   : > { %v1405_v37 = vrot.slane %v4550_v61, %v1404_v3  ;;  %v1413_v38 = vrot.slane %v4550_v61, %v1412_v20 }
 0x944   : > { %3482 = vmatpush3.bf16.msra.mxu1 %v3481_v28  ;;  %3514 = vmatpush3.bf16.msra.mxu0 %v3513_v29  ;;  %v3557_v28 = vpack.c.bf16 %v2146_v16, %v2145_v15  ;;  %v2115_v29 = vld [vmem:[%s5262_s9 + $0x210] sm:$0xff]  ;;  %v1425_v15 = vrot.slane %v4538_v57, %v1392_v60  ;;  %v2169_v60 = vld [vmem:[%s5262_s9 + $0x3c0] sm:$0xff] }
 0x945   : > { %3484 = vmatprep.subr.bf16.mxu1 %v3483_v31  ;;  %3516 = vmatprep.subr.bf16.mxu0 %v3515_v32 }
 0x948   : > { %3486 = vmatpush3.bf16.msra.mxu1 %v3485_v35  ;;  %3518 = vmatpush3.bf16.msra.mxu0 %v3517_v36  ;;  %v2148_v35 = vld [vmem:[%s5262_s9 + $0x318] sm:$0xff]  ;;  %v2133_v36 = vld [vmem:[%s5262_s9 + $0x2a0] sm:$0xff] }
 0x949   : > { %3488 = vmatprep.subr.bf16.mxu1 %v3487_v39  ;;  %3520 = vmatprep.subr.bf16.mxu0 %v3519_v43  ;;  %v2165_v39 = vld [vmem:[%s5262_s9 + $0x3a0] sm:$0xff]  ;;  %v3529_v43 = vpack.c.bf16 %v2116_v30, %v2115_v29  ;;  %v3531_v49 = vpack.c.bf16 %v2134_v8, %v2133_v36  ;;  %v2122_v29 = vld [vmem:[%s5262_s9 + $0x248] sm:$0xff]  ;;  %v2139_v36 = vld [vmem:[%s5262_s9 + $0x2d0] sm:$0xff] }
 0x94a   : > { %v3563_v50 = vpack.c.bf16 %v2166_v40, %v2165_v39  ;;  %v2172_v8 = vld [vmem:[%s5262_s9 + $0x3d8] sm:$0xff]  ;;  %v1400_v39 = vsub.s32 4, %v4532_v55  ;;  %v2273_v55 = vld [vmem:[%s5262_s9 + $0x700] sm:$0xff] }
 0x94c   : > { %3490 = vmatpush3.bf16.msra.mxu1 %v3489_v44  ;;  %3522 = vmatpush3.bf16.msra.mxu0 %v3521_v47  ;;  %v3561_v44 = vpack.c.bf16 %v2148_v35, %v2147_v34  ;;  %v2153_v34 = vld [vmem:[%s5262_s9 + $0x340] sm:$0xff]  ;;  %v2154_v35 = vld [vmem:[%s5262_s9 + $0x348] sm:$0xff] }
 0x94d   : > { %3524 = vmatprep.subr.bf16.mxu1 %v3523_v51  ;;  %3556 = vmatprep.subr.bf16.mxu0 %v3555_v53  ;;  %v2149_v51 = vld [vmem:[%s5262_s9 + $0x320] sm:$0xff]  ;;  %v2135_v53 = vld [vmem:[%s5262_s9 + $0x2b0] sm:$0xff] }
 0x9ea   : > { %v1531_v5 = vpop.f32.mrb[12].mxu1  ;;  %v1602_v7 = vpop.f32.mrb[8].mxu0 }
 0x9eb   : > { %v1532_v11 = vadd.f32 %v1531_v5, %v1385_v0  ;;  %v1603_v12 = vadd.f32 %v1602_v7, %v1393_v1  ;;  %v1533_v13 = vpop.f32.mrb[13].mxu1  ;;  %v1604_v14 = vpop.f32.mrb[9].mxu0  ;;  %v2136_v1 = vld [vmem:[%s5262_s9 + $0x2b8] sm:$0xff]  ;;  %v3533_v5 = vpack.c.bf16 %v2118_v46, %v2117_v45  ;;  %v2155_v46 = vld [vmem:[%s5262_s9 + $0x350] sm:$0xff] }
 0x9ec   : > { %v1534_v18 = vadd.f32 %v1533_v13, %v1389_v2  ;;  %v1605_v19 = vadd.f32 %v1604_v14, %v1397_v4  ;;  %v2167_v2 = vld [vmem:[%s5262_s9 + $0x3b0] sm:$0xff]  ;;  %v2168_v4 = vld [vmem:[%s5262_s9 + $0x3b8] sm:$0xff]  ;;  %v3535_v59 = vpack.c.bf16 %v2136_v1, %v2135_v53  ;;  %v2173_v53 = vld [vmem:[%s5262_s9 + $0x3e0] sm:$0xff] }
 0x9ed   : > { %v2033_v31 = vmax.f32 %v1532_v11, 0.0  ;;  %v2035_v32 = vmax.f32 %v1603_v12, 0.0  ;;  %v3565_v11 = vpack.c.bf16 %v2150_v52, %v2149_v51  ;;  %v2119_v12 = vld [vmem:[%s5262_s9 + $0x230] sm:$0xff]  ;;  %v2120_v13 = vld [vmem:[%s5262_s9 + $0x238] sm:$0xff]  ;;  %v3567_v16 = vpack.c.bf16 %v2168_v4, %v2167_v2  ;;  %v2141_v51 = vld [vmem:[%s5262_s9 + $0x2e0] sm:$0xff] }
 0x9ee   : > { %v2034_v25 = vmax.f32 %v1534_v18, 0.0  ;;  %v2036_v26 = vmax.f32 %v1605_v19, 0.0  ;;  %v2151_v14 = vld [vmem:[%s5262_s9 + $0x330] sm:$0xff]  ;;  %v2137_v18 = vld [vmem:[%s5262_s9 + $0x2c0] sm:$0xff]  ;;  %v2138_v19 = vld [vmem:[%s5262_s9 + $0x2c8] sm:$0xff] }
 0x9ef   : > { %v2124_v45 = vld [vmem:[%s5262_s9 + $0x258] sm:$0xff]  ;;  %v2142_v52 = vld [vmem:[%s5262_s9 + $0x2e8] sm:$0xff] }
 0x9f0   : > { %2376 = vmatprep.mubr.f32.mxu1 %v2034_v25  ;;  %2446 = vmatprep.mubr.f32.mxu0 %v2036_v26  ;;  %v3537_v25 = vpack.c.bf16 %v2120_v13, %v2119_v12  ;;  %v3569_v26 = vpack.c.bf16 %v2152_v17, %v2151_v14  ;;  %v2175_v17 = vld [vmem:[%s5262_s9 + $0x3f0] sm:$0xff] }
 0x9f1   : > { %2377 = vmatmul.mubr.f32.vlgmr.msra.gmra.mrb[20].mxu1 %v2033_v31  ;;  %2447 = vmatmul.mubr.f32.vlgmr.msra.gmra.mrb[16].mxu0 %v2035_v32 }
 0x9f2   : > { %v4622_v41 = vpop.f32.mrb[14].mxu1  ;;  %v4624_v42 = vpop.f32.mrb[10].mxu0  ;;  %3526 = vmatpush3.bf16.msra.mxu1 %v3525_v27  ;;  %3558 = vmatpush3.bf16.msra.mxu0 %v3557_v28  ;;  %v3539_v27 = vpack.c.bf16 %v2138_v19, %v2137_v18  ;;  %v2121_v28 = vld [vmem:[%s5262_s9 + $0x240] sm:$0xff]  ;;  %v2176_v18 = vld [vmem:[%s5262_s9 + $0x3f8] sm:$0xff]  ;;  %v1401_v19 = vrot.slane %v4550_v61, %v1400_v39 }
 0x9f3   : > { %v1675_v47 = vpop.f32.mrb[15].mxu1  ;;  %v1746_v48 = vpop.f32.mrb[11].mxu0  ;;  %3528 = vmatprep.subr.bf16.mxu1 %v3527_v6  ;;  %3560 = vmatprep.subr.bf16.mxu0 %v3559_v33  ;;  %v3571_v33 = vpack.c.bf16 %v2170_v21, %v2169_v60  ;;  %v3541_v40 = vpack.c.bf16 %v2122_v29, %v2121_v28  ;;  %v3583_v28 = vpack.c.bf16 %v2176_v18, %v2175_v17  ;;  %v2160_v29 = vld [vmem:[%s5262_s9 + $0x378] sm:$0xff]  ;;  %v2181_v17 = vld [vmem:[%s5262_s9 + $0x420] sm:$0xff]  ;;  %v2182_v18 = vld [vmem:[%s5262_s9 + $0x428] sm:$0xff] }
 0x9f4   : > { %v1676_v54 = vadd.f32 %v1675_v47, %v1405_v37  ;;  %v1747_v0 = vadd.f32 %v1746_v48, %v1413_v38  ;;  %v2140_v37 = vld [vmem:[%s5262_s9 + $0x2d8] sm:$0xff]  ;;  %v2171_v38 = vld [vmem:[%s5262_s9 + $0x3d0] sm:$0xff]  ;;  %v1433_v47 = vrot.slane %v4538_v57, %v1400_v39  ;;  %v1674_v39 = vadd.f32 %v4622_v41, %v1401_v19  ;;  %v2210_v41 = vld [vmem:[%s5262_s9 + $0x508] sm:$0xff] }
 0x9f5   : > { %v3543_v48 = vpack.c.bf16 %v2140_v37, %v2139_v36  ;;  %v1429_v36 = vrot.slane %v4538_v57, %v1396_v63  ;;  %v2178_v63 = vld [vmem:[%s5262_s9 + $0x408] sm:$0xff]  ;;  %v2213_v19 = vld [vmem:[%s5262_s9 + $0x520] sm:$0xff] }
 0x9f6   : > { %v2038_v7 = vmax.f32 %v1676_v54, 0.0  ;;  %v2040_v9 = vmax.f32 %v1747_v0, 0.0  ;;  %3530 = vmatpush3.bf16.msra.mxu1 %v3529_v43  ;;  %3562 = vmatpush3.bf16.msra.mxu0 %v3561_v44  ;;  %v3573_v43 = vpack.c.bf16 %v2154_v35, %v2153_v34  ;;  %v2123_v44 = vld [vmem:[%s5262_s9 + $0x250] sm:$0xff]  ;;  %v2174_v54 = vld [vmem:[%s5262_s9 + $0x3e8] sm:$0xff] }
 0x9f7   : > { %3532 = vmatprep.subr.bf16.mxu1 %v3531_v49  ;;  %3564 = vmatprep.subr.bf16.mxu0 %v3563_v50  ;;  %v3575_v49 = vpack.c.bf16 %v2172_v8, %v2171_v38  ;;  %v2156_v50 = vld [vmem:[%s5262_s9 + $0x358] sm:$0xff]  ;;  %v3545_v2 = vpack.c.bf16 %v2124_v45, %v2123_v44  ;;  %v3579_v14 = vpack.c.bf16 %v2174_v54, %v2173_v53  ;;  %v2194_v34 = vld [vmem:[%s5262_s9 + $0x488] sm:$0xff]  ;;  %v2209_v45 = vld [vmem:[%s5262_s9 + $0x500] sm:$0xff] }
 0x9f8   : > { %2516 = vmatprep.mubr.f32.mxu1 %v2038_v7  ;;  %2586 = vmatprep.mubr.f32.mxu0 %v2040_v9  ;;  %v3577_v4 = vpack.c.bf16 %v2156_v50, %v2155_v46  ;;  %v2125_v7 = vld [vmem:[%s5262_s9 + $0x260] sm:$0xff]  ;;  %v2126_v9 = vld [vmem:[%s5262_s9 + $0x268] sm:$0xff]  ;;  %v2037_v50 = vmax.f32 %v1674_v39, 0.0  ;;  %v2180_v53 = vld [vmem:[%s5262_s9 + $0x418] sm:$0xff] }
 0x9f9   : > { %v3549_v60 = vpack.c.bf16 %v2126_v9, %v2125_v7  ;;  %v2226_v35 = vld [vmem:[%s5262_s9 + $0x588] sm:$0xff]  ;;  %v2211_v54 = vld [vmem:[%s5262_s9 + $0x510] sm:$0xff] }
 0x9fa   : > { %v1815_v22 = vpop.f32.mrb[16].mxu1  ;;  %v1886_v23 = vpop.f32.mrb[12].mxu0  ;;  %3534 = vmatpush3.bf16.msra.mxu1 %v3533_v5  ;;  %3566 = vmatpush3.bf16.msra.mxu0 %v3565_v11  ;;  %v3547_v5 = vpack.c.bf16 %v2142_v52, %v2141_v51  ;;  %v2179_v52 = vld [vmem:[%s5262_s9 + $0x410] sm:$0xff]  ;;  %v2198_v7 = vld [vmem:[%s5262_s9 + $0x4a8] sm:$0xff] }
 0x9fb   : > { %v4686_v30 = vadd.f32 %v1815_v22, %v1417_v10  ;;  %v4688_v31 = vadd.f32 %v1886_v23, %v1425_v15  ;;  %v4690_v32 = vpop.f32.mrb[17].mxu1  ;;  %v4692_v6 = vpop.f32.mrb[13].mxu0  ;;  %3536 = vmatprep.subr.bf16.mxu1 %v3535_v59  ;;  %3568 = vmatprep.subr.bf16.mxu0 %v3567_v16  ;;  %v2157_v15 = vld [vmem:[%s5262_s9 + $0x360] sm:$0xff]  ;;  %v2158_v59 = vld [vmem:[%s5262_s9 + $0x368] sm:$0xff]  ;;  %v2144_v16 = vld [vmem:[%s5262_s9 + $0x2f8] sm:$0xff] }
 0x9fc   : > { %v3581_v21 = vpack.c.bf16 %v2158_v59, %v2157_v15  ;;  %v2127_v22 = vld [vmem:[%s5262_s9 + $0x270] sm:$0xff]  ;;  %v2128_v23 = vld [vmem:[%s5262_s9 + $0x278] sm:$0xff]  ;;  %v1889_v46 = vadd.f32 %v4692_v6, %v1429_v36  ;;  %v3621_v6 = vpack.c.bf16 %v2210_v41, %v2209_v45  ;;  %v2230_v15 = vld [vmem:[%s5262_s9 + $0x5a8] sm:$0xff]  ;;  %v3593_v59 = vpack.c.bf16 %v2180_v53, %v2179_v52 }
 0x9fd   : > { %v3553_v37 = vpack.c.bf16 %v2128_v23, %v2127_v22  ;;  %v2199_v22 = vld [vmem:[%s5262_s9 + $0x4b0] sm:$0xff]  ;;  %v2200_v23 = vld [vmem:[%s5262_s9 + $0x4b8] sm:$0xff]  ;;  %v2201_v36 = vld [vmem:[%s5262_s9 + $0x4c0] sm:$0xff] }
 0x9fe   : > { %3538 = vmatpush3.bf16.msra.mxu1 %v3537_v25  ;;  %3570 = vmatpush3.bf16.msra.mxu0 %v3569_v26  ;;  %v2159_v25 = vld [vmem:[%s5262_s9 + $0x370] sm:$0xff]  ;;  %v1409_v26 = vrot.slane %v4550_v61, %v1408_v56  ;;  %v1421_v56 = vrot.slane %v4538_v57, %v1388_v62  ;;  %v2225_v61 = vld [vmem:[%s5262_s9 + $0x580] sm:$0xff]  ;;  %v2044_v9 = vmax.f32 %v1889_v46, 0.0  ;;  %v2218_v41 = vld [vmem:[%s5262_s9 + $0x548] sm:$0xff] }
 0x9ff   : > { %3540 = vmatprep.subr.bf16.mxu1 %v3539_v27  ;;  %3572 = vmatprep.subr.bf16.mxu0 %v3571_v33  ;;  %v2193_v33 = vld [vmem:[%s5262_s9 + $0x480] sm:$0xff]  ;;  %v3585_v38 = vpack.c.bf16 %v2160_v29, %v2159_v25  ;;  %v2231_v25 = vld [vmem:[%s5262_s9 + $0x5b0] sm:$0xff]  ;;  %v3599_v29 = vpack.c.bf16 %v2200_v23, %v2199_v22  ;;  %v2204_v46 = vld [vmem:[%s5262_s9 + $0x4d8] sm:$0xff] }
 0xa00   : > { %v3587_v8 = vpack.c.bf16 %v2194_v34, %v2193_v33  ;;  %v1745_v62 = vadd.f32 %v4624_v42, %v1409_v26  ;;  %v1818_v44 = vadd.f32 %v4690_v32, %v1421_v56  ;;  %v2195_v42 = vld [vmem:[%s5262_s9 + $0x490] sm:$0xff]  ;;  %v2232_v26 = vld [vmem:[%s5262_s9 + $0x5b8] sm:$0xff] }
 0xa01   : > { %v2227_v32 = vld [vmem:[%s5262_s9 + $0x590] sm:$0xff]  ;;  %v2184_v34 = vld [vmem:[%s5262_s9 + $0x438] sm:$0xff] }
 0xa02   : > { %v1957_v0 = vpop.f32.mrb[18].mxu1  ;;  %v2028_v1 = vpop.f32.mrb[14].mxu0  ;;  %3542 = vmatpush3.bf16.msra.mxu1 %v3541_v40  ;;  %3574 = vmatpush3.bf16.msra.mxu0 %v3573_v43  ;;  %v3619_v40 = vpack.c.bf16 %v2226_v35, %v2225_v61  ;;  %v2177_v43 = vld [vmem:[%s5262_s9 + $0x400] sm:$0xff]  ;;  %v2039_v51 = vmax.f32 %v1745_v62, 0.0  ;;  %v2183_v33 = vld [vmem:[%s5262_s9 + $0x430] sm:$0xff]  ;;  %v3631_v61 = vpack.c.bf16 %v2232_v26, %v2231_v25  ;;  %v2216_v35 = vld [vmem:[%s5262_s9 + $0x538] sm:$0xff] }
 0xa03   : > { %v4744_v10 = vadd.f32 %v1957_v0, %v1433_v47  ;;  %v4747_v11 = vadd.f32 %v2028_v1, %v4543_v58  ;;  %v4749_v12 = vpop.f32.mrb[19].mxu1  ;;  %v4751_v13 = vpop.f32.mrb[15].mxu0  ;;  %3544 = vmatprep.subr.bf16.mxu1 %v3543_v48  ;;  %3576 = vmatprep.subr.bf16.mxu0 %v3575_v49  ;;  %v2143_v58 = vld [vmem:[%s5262_s9 + $0x2f0] sm:$0xff]  ;;  %v2196_v47 = vld [vmem:[%s5262_s9 + $0x498] sm:$0xff]  ;;  %v3589_v49 = vpack.c.bf16 %v2178_v63, %v2177_v43  ;;  %v2042_v0 = vmax.f32 %v1818_v44, 0.0  ;;  %v2185_v43 = vld [vmem:[%s5262_s9 + $0x440] sm:$0xff] }
 0xa04   : > { %v3551_v27 = vpack.c.bf16 %v2144_v16, %v2143_v58  ;;  %v2228_v48 = vld [vmem:[%s5262_s9 + $0x598] sm:$0xff]  ;;  %v3591_v1 = vpack.c.bf16 %v2196_v47, %v2195_v42  ;;  %v2215_v56 = vld [vmem:[%s5262_s9 + $0x530] sm:$0xff]  ;;  %v3601_v39 = vpack.c.bf16 %v2184_v34, %v2183_v33  ;;  %v2186_v63 = vld [vmem:[%s5262_s9 + $0x448] sm:$0xff] }
 0xa05   : > { %v3633_v62 = vpack.c.bf16 %v2216_v35, %v2215_v56  ;;  %v2217_v44 = vld [vmem:[%s5262_s9 + $0x540] sm:$0xff]  ;;  %v2203_v42 = vld [vmem:[%s5262_s9 + $0x4d0] sm:$0xff]  ;;  %v2192_v26 = vld [vmem:[%s5262_s9 + $0x478] sm:$0xff]  ;;  %v1437_v56 = vrot.slane %v4538_v57, %v1404_v3 }
 0xa06   : > { %3546 = vmatpush3.bf16.msra.mxu1 %v3545_v2  ;;  %3578 = vmatpush3.bf16.msra.mxu0 %v3577_v4  ;;  %v3623_v2 = vpack.c.bf16 %v2228_v48, %v2227_v32  ;;  %v2212_v4 = vld [vmem:[%s5262_s9 + $0x518] sm:$0xff]  ;;  %v2235_v47 = vld [vmem:[%s5262_s9 + $0x5d0] sm:$0xff]  ;;  %v3605_v48 = vpack.c.bf16 %v2186_v63, %v2185_v43  ;;  %v2257_v33 = vld [vmem:[%s5262_s9 + $0x680] sm:$0xff] }
 0xa07   : > { %3548 = vmatprep.subr.bf16.mxu1 %v3547_v5  ;;  %3580 = vmatprep.subr.bf16.mxu0 %v3579_v14  ;;  %v2197_v5 = vld [vmem:[%s5262_s9 + $0x4a0] sm:$0xff]  ;;  %v3625_v58 = vpack.c.bf16 %v2212_v4, %v2211_v54  ;;  %v2236_v32 = vld [vmem:[%s5262_s9 + $0x5d8] sm:$0xff]  ;;  %v2219_v52 = vld [vmem:[%s5262_s9 + $0x550] sm:$0xff] }
 0xa08   : > { %v2229_v14 = vld [vmem:[%s5262_s9 + $0x5a0] sm:$0xff]  ;;  %v3595_v16 = vpack.c.bf16 %v2198_v7, %v2197_v5  ;;  %v3639_v53 = vpack.c.bf16 %v2236_v32, %v2235_v47  ;;  %v2220_v54 = vld [vmem:[%s5262_s9 + $0x558] sm:$0xff]  ;;  %v2238_v4 = vld [vmem:[%s5262_s9 + $0x5e8] sm:$0xff]  ;;  %v2043_v32 = vmax.f32 %v4688_v31, 0.0 }
 0xa09   : > { %v3641_v7 = vpack.c.bf16 %v2220_v54, %v2219_v52  ;;  %v2191_v25 = vld [vmem:[%s5262_s9 + $0x470] sm:$0xff]  ;;  %v2258_v34 = vld [vmem:[%s5262_s9 + $0x688] sm:$0xff]  ;;  %v2241_v3 = vld [vmem:[%s5262_s9 + $0x600] sm:$0xff] }
 0xa0a   : > { %3550 = vmatpush3.bf16.msra.mxu1 %v3549_v60  ;;  %3582 = vmatpush3.bf16.msra.mxu0 %v3581_v21  ;;  %v3627_v60 = vpack.c.bf16 %v2230_v15, %v2229_v14  ;;  %v2214_v21 = vld [vmem:[%s5262_s9 + $0x528] sm:$0xff]  ;;  %v2189_v14 = vld [vmem:[%s5262_s9 + $0x460] sm:$0xff]  ;;  %v2260_v43 = vld [vmem:[%s5262_s9 + $0x698] sm:$0xff] }
 0xa0b   : > { %3552 = vmatprep.subr.bf16.mxu1 %v3551_v27  ;;  %3584 = vmatprep.subr.bf16.mxu0 %v3583_v28  ;;  %v3597_v27 = vpack.c.bf16 %v2182_v18, %v2181_v17  ;;  %v3629_v28 = vpack.c.bf16 %v2214_v21, %v2213_v19  ;;  %v2190_v15 = vld [vmem:[%s5262_s9 + $0x468] sm:$0xff]  ;;  %v2207_v17 = vld [vmem:[%s5262_s9 + $0x4f0] sm:$0xff]  ;;  %v2208_v18 = vld [vmem:[%s5262_s9 + $0x4f8] sm:$0xff] }
 0xa0c   : > { %v2239_v19 = vld [vmem:[%s5262_s9 + $0x5f0] sm:$0xff]  ;;  %v3613_v21 = vpack.c.bf16 %v2190_v15, %v2189_v14  ;;  %v3615_v23 = vpack.c.bf16 %v2208_v18, %v2207_v17  ;;  %v2290_v35 = vld [vmem:[%s5262_s9 + $0x788] sm:$0xff]  ;;  %v2293_v31 = vld [vmem:[%s5262_s9 + $0x7a0] sm:$0xff] }
 0xa0d   : > { %v2275_v47 = vld [vmem:[%s5262_s9 + $0x710] sm:$0xff]  ;;  %v2294_v52 = vld [vmem:[%s5262_s9 + $0x7a8] sm:$0xff]  ;;  %v2264_v15 = vld [vmem:[%s5262_s9 + $0x6b8] sm:$0xff] }
 0xa0e   : > { %3554 = vmatpush3.bf16.msra.mxu1 %v3553_v37  ;;  %3586 = vmatpush3.bf16.msra.mxu0 %v3585_v38  ;;  %v2202_v37 = vld [vmem:[%s5262_s9 + $0x4c8] sm:$0xff]  ;;  %v2233_v38 = vld [vmem:[%s5262_s9 + $0x5c0] sm:$0xff]  ;;  %v2263_v14 = vld [vmem:[%s5262_s9 + $0x6b0] sm:$0xff] }
 0xa0f   : > { %3588 = vmatprep.subr.bf16.mxu1 %v3587_v8  ;;  %3620 = vmatprep.subr.bf16.mxu0 %v3619_v40  ;;  %v2234_v8 = vld [vmem:[%s5262_s9 + $0x5c8] sm:$0xff]  ;;  %v3603_v40 = vpack.c.bf16 %v2202_v37, %v2201_v36  ;;  %v1445_v36 = vrot.slane %v4538_v57, %v1412_v20  ;;  %v3617_v37 = vpack.c.bf16 %v2192_v26, %v2191_v25  ;;  %v2265_v25 = vld [vmem:[%s5262_s9 + $0x6c0] sm:$0xff] }
 0xa10   : > { %v3635_v45 = vpack.c.bf16 %v2234_v8, %v2233_v38  ;;  %v3651_v8 = vpack.c.bf16 %v2258_v34, %v2257_v33  ;;  %v2274_v57 = vld [vmem:[%s5262_s9 + $0x708] sm:$0xff]  ;;  %v1960_v20 = vadd.f32 %v4749_v12, %v1437_v56  ;;  %v2292_v12 = vld [vmem:[%s5262_s9 + $0x798] sm:$0xff]  ;;  %v3663_v18 = vpack.c.bf16 %v2264_v15, %v2263_v14  ;;  %v2249_v56 = vld [vmem:[%s5262_s9 + $0x640] sm:$0xff] }
 0xa11   : > { %2517 = vmatmul.mubr.f32.vlgmr.msra.gmra.mrb[22].mxu1 %v2037_v50  ;;  %2587 = vmatmul.mubr.f32.vlgmr.msra.gmra.mrb[18].mxu0 %v2039_v51  ;;  %v3607_v50 = vpack.c.bf16 %v2204_v46, %v2203_v42  ;;  %v2187_v51 = vld [vmem:[%s5262_s9 + $0x450] sm:$0xff]  ;;  %v2031_v63 = vadd.f32 %v4751_v13, %v1445_v36  ;;  %v3685_v42 = vpack.c.bf16 %v2274_v57, %v2273_v55  ;;  %v2244_v13 = vld [vmem:[%s5262_s9 + $0x618] sm:$0xff]  ;;  %v2266_v26 = vld [vmem:[%s5262_s9 + $0x6c8] sm:$0xff]  ;;  %v2045_v15 = vmax.f32 %v4744_v10, 0.0 }
 0xa12   : > { %3590 = vmatpush3.bf16.msra.mxu1 %v3589_v49  ;;  %2656 = vmatprep.mubr.f32.mxu1 %v2042_v0  ;;  %v3637_v49 = vpack.c.bf16 %v2218_v41, %v2217_v44  ;;  %v2205_v0 = vld [vmem:[%s5262_s9 + $0x4e0] sm:$0xff]  ;;  %v2041_v41 = vmax.f32 %v4686_v30, 0.0  ;;  %v2243_v46 = vld [vmem:[%s5262_s9 + $0x610] sm:$0xff]  ;;  %v2276_v30 = vld [vmem:[%s5262_s9 + $0x718] sm:$0xff]  ;;  %v3667_v34 = vpack.c.bf16 %v2266_v26, %v2265_v25 }
 0xa13   : > { %3622 = vmatpush3.bf16.msra.mxu0 %v3621_v6  ;;  %2726 = vmatprep.mubr.f32.mxu0 %v2044_v9  ;;  %v2188_v6 = vld [vmem:[%s5262_s9 + $0x458] sm:$0xff]  ;;  %v3657_v54 = vpack.c.bf16 %v2244_v13, %v2243_v46 }
 0xa14   : > { %3592 = vmatprep.subr.bf16.mxu1 %v3591_v1  ;;  %3624 = vmatprep.subr.bf16.mxu0 %v3623_v2  ;;  %v2206_v1 = vld [vmem:[%s5262_s9 + $0x4e8] sm:$0xff]  ;;  %v2237_v2 = vld [vmem:[%s5262_s9 + $0x5e0] sm:$0xff]  ;;  %v3609_v5 = vpack.c.bf16 %v2188_v6, %v2187_v51  ;;  %v2046_v51 = vmax.f32 %v1960_v20, 0.0  ;;  %v2251_v20 = vld [vmem:[%s5262_s9 + $0x650] sm:$0xff] }
 0xa15   : > { %v3611_v9 = vpack.c.bf16 %v2206_v1, %v2205_v0  ;;  %v3689_v0 = vpack.c.bf16 %v2276_v30, %v2275_v47  ;;  %v2285_v30 = vld [vmem:[%s5262_s9 + $0x760] sm:$0xff] }
 0xa16   : > { %3594 = vmatpush3.bf16.msra.mxu1 %v3593_v59  ;;  %v2221_v59 = vld [vmem:[%s5262_s9 + $0x560] sm:$0xff] }
 0xa17   : > { %3626 = vmatpush3.bf16.msra.mxu0 %v3625_v58  ;;  %3596 = vmatprep.subr.bf16.mxu1 %v3595_v16  ;;  %v3643_v58 = vpack.c.bf16 %v2238_v4, %v2237_v2  ;;  %v2222_v16 = vld [vmem:[%s5262_s9 + $0x568] sm:$0xff]  ;;  %v2245_v2 = vld [vmem:[%s5262_s9 + $0x620] sm:$0xff] }
 0xa18   : > { %3628 = vmatprep.subr.bf16.mxu0 %v3627_v60  ;;  %v2240_v60 = vld [vmem:[%s5262_s9 + $0x5f8] sm:$0xff]  ;;  %v3645_v22 = vpack.c.bf16 %v2222_v16, %v2221_v59  ;;  %v2246_v4 = vld [vmem:[%s5262_s9 + $0x628] sm:$0xff]  ;;  %v2295_v59 = vld [vmem:[%s5262_s9 + $0x7b0] sm:$0xff] }
 0xa19   : > { %v3661_v16 = vpack.c.bf16 %v2246_v4, %v2245_v2  ;;  %v2256_v2 = vld [vmem:[%s5262_s9 + $0x678] sm:$0xff] }
 0xa1a   : > { %3598 = vmatpush3.bf16.msra.mxu1 %v3597_v27  ;;  %v2223_v27 = vld [vmem:[%s5262_s9 + $0x570] sm:$0xff] }
 0xa1b   : > { %3630 = vmatpush3.bf16.msra.mxu0 %v3629_v28  ;;  %3600 = vmatprep.subr.bf16.mxu1 %v3599_v29  ;;  %v3647_v28 = vpack.c.bf16 %v2240_v60, %v2239_v19  ;;  %v2224_v29 = vld [vmem:[%s5262_s9 + $0x578] sm:$0xff]  ;;  %v2247_v19 = vld [vmem:[%s5262_s9 + $0x630] sm:$0xff] }
 0xa1c   : > { %3632 = vmatprep.subr.bf16.mxu0 %v3631_v61  ;;  %v2289_v61 = vld [vmem:[%s5262_s9 + $0x780] sm:$0xff]  ;;  %v3649_v38 = vpack.c.bf16 %v2224_v29, %v2223_v27  ;;  %v2248_v60 = vld [vmem:[%s5262_s9 + $0x638] sm:$0xff] }
 0xa1d   : > { %v2297_v27 = vld [vmem:[%s5262_s9 + $0x7c0] sm:$0xff]  ;;  %v3665_v29 = vpack.c.bf16 %v2248_v60, %v2247_v19 }
 0xa1e   : > { %3602 = vmatpush3.bf16.msra.mxu1 %v3601_v39  ;;  %v2242_v39 = vld [vmem:[%s5262_s9 + $0x608] sm:$0xff] }
 0xa1f   : > { %3634 = vmatpush3.bf16.msra.mxu0 %v3633_v62  ;;  %3604 = vmatprep.subr.bf16.mxu1 %v3603_v40  ;;  %v3683_v62 = vpack.c.bf16 %v2290_v35, %v2289_v61  ;;  %v2259_v40 = vld [vmem:[%s5262_s9 + $0x690] sm:$0xff]  ;;  %v3653_v44 = vpack.c.bf16 %v2242_v39, %v2241_v3  ;;  %v2250_v61 = vld [vmem:[%s5262_s9 + $0x648] sm:$0xff]  ;;  %v2281_v35 = vld [vmem:[%s5262_s9 + $0x740] sm:$0xff] }
 0xa20   : > { %3636 = vmatprep.subr.bf16.mxu0 %v3635_v45  ;;  %v2291_v45 = vld [vmem:[%s5262_s9 + $0x790] sm:$0xff]  ;;  %v2300_v39 = vld [vmem:[%s5262_s9 + $0x7d8] sm:$0xff] }
 0xa21   : > { %v3687_v6 = vpack.c.bf16 %v2292_v12, %v2291_v45  ;;  %v2299_v3 = vld [vmem:[%s5262_s9 + $0x7d0] sm:$0xff]  ;;  %v2269_v45 = vld [vmem:[%s5262_s9 + $0x6e0] sm:$0xff]  ;;  %v2270_v12 = vld [vmem:[%s5262_s9 + $0x6e8] sm:$0xff] }
 0xa22   : > { %3606 = vmatpush3.bf16.msra.mxu1 %v3605_v48  ;;  %v3655_v48 = vpack.c.bf16 %v2260_v43, %v2259_v40  ;;  %v2252_v40 = vld [vmem:[%s5262_s9 + $0x658] sm:$0xff]  ;;  %v2283_v43 = vld [vmem:[%s5262_s9 + $0x750] sm:$0xff]  ;;  %v3675_v47 = vpack.c.bf16 %v2270_v12, %v2269_v45 }
 0xa23   : > { %3638 = vmatpush3.bf16.msra.mxu0 %v3637_v49  ;;  %3608 = vmatprep.subr.bf16.mxu1 %v3607_v50  ;;  %v2261_v49 = vld [vmem:[%s5262_s9 + $0x6a0] sm:$0xff]  ;;  %v2262_v50 = vld [vmem:[%s5262_s9 + $0x6a8] sm:$0xff]  ;;  %v3673_v46 = vpack.c.bf16 %v2252_v40, %v2251_v20 }
 0xa24   : > { %3640 = vmatprep.subr.bf16.mxu0 %v3639_v53  ;;  %v2048_v53 = vmax.f32 %v2031_v63, 0.0  ;;  %v3659_v1 = vpack.c.bf16 %v2262_v50, %v2261_v49  ;;  %v3703_v63 = vpack.c.bf16 %v2300_v39, %v2299_v3  ;;  %v2286_v50 = vld [vmem:[%s5262_s9 + $0x768] sm:$0xff] }
 0xa26   : > { %3610 = vmatpush3.bf16.msra.mxu1 %v3609_v5  ;;  %v2277_v5 = vld [vmem:[%s5262_s9 + $0x720] sm:$0xff] }
 0xa27   : > { %3642 = vmatpush3.bf16.msra.mxu0 %v3641_v7  ;;  %3612 = vmatprep.subr.bf16.mxu1 %v3611_v9  ;;  %v3691_v7 = vpack.c.bf16 %v2294_v52, %v2293_v31  ;;  %v2278_v9 = vld [vmem:[%s5262_s9 + $0x728] sm:$0xff]  ;;  %v2303_v31 = vld [vmem:[%s5262_s9 + $0x7f0] sm:$0xff]  ;;  %v2304_v52 = vld [vmem:[%s5262_s9 + $0x7f8] sm:$0xff] }
 0xa28   : > { %3644 = vmatprep.subr.bf16.mxu0 %v3643_v58  ;;  %v2296_v58 = vld [vmem:[%s5262_s9 + $0x7b8] sm:$0xff]  ;;  %v3693_v17 = vpack.c.bf16 %v2278_v9, %v2277_v5  ;;  %v3711_v4 = vpack.c.bf16 %v2304_v52, %v2303_v31  ;;  %v2287_v5 = vld [vmem:[%s5262_s9 + $0x770] sm:$0xff] }
 0xa2a   : > { %3614 = vmatpush3.bf16.msra.mxu1 %v3613_v21  ;;  %v2279_v21 = vld [vmem:[%s5262_s9 + $0x730] sm:$0xff] }
 0xa2b   : > { %3646 = vmatpush3.bf16.msra.mxu0 %v3645_v22  ;;  %3616 = vmatprep.subr.bf16.mxu1 %v3615_v23  ;;  %v3695_v22 = vpack.c.bf16 %v2296_v58, %v2295_v59  ;;  %v2280_v23 = vld [vmem:[%s5262_s9 + $0x738] sm:$0xff]  ;;  %v2047_v59 = vmax.f32 %v4747_v11, 0.0 }
 0xa2c   : > { %3648 = vmatprep.subr.bf16.mxu0 %v3647_v28  ;;  %v2298_v28 = vld [vmem:[%s5262_s9 + $0x7c8] sm:$0xff]  ;;  %v3697_v33 = vpack.c.bf16 %v2280_v23, %v2279_v21 }
 0xa2d   : > { %v3699_v36 = vpack.c.bf16 %v2298_v28, %v2297_v27 }
 0xa2e   : > { %3618 = vmatpush3.bf16.msra.mxu1 %v3617_v37  ;;  %v2282_v37 = vld [vmem:[%s5262_s9 + $0x748] sm:$0xff] }
 0xa2f   : > { %3650 = vmatpush3.bf16.msra.mxu0 %v3649_v38  ;;  %3652 = vmatprep.subr.bf16.mxu1 %v3651_v8  ;;  %v2267_v38 = vld [vmem:[%s5262_s9 + $0x6d0] sm:$0xff]  ;;  %v2268_v8 = vld [vmem:[%s5262_s9 + $0x6d8] sm:$0xff]  ;;  %v3701_v55 = vpack.c.bf16 %v2282_v37, %v2281_v35 }
 0xa30   : > { %3684 = vmatprep.subr.bf16.mxu0 %v3683_v62  ;;  %v3669_v62 = vpack.c.bf16 %v2250_v61, %v2249_v56  ;;  %v3671_v57 = vpack.c.bf16 %v2268_v8, %v2267_v38 }
 0xa31   : > { %2657 = vmatmul.mubr.f32.vlgmr.msra.gmra.mrb[24].mxu1 %v2041_v41  ;;  %v2301_v41 = vld [vmem:[%s5262_s9 + $0x7e0] sm:$0xff] }
 0xa32   : > { %2727 = vmatmul.mubr.f32.vlgmr.msra.gmra.mrb[20].mxu0 %v2043_v32  ;;  %3654 = vmatpush3.bf16.msra.mxu1 %v3653_v44  ;;  %v2284_v44 = vld [vmem:[%s5262_s9 + $0x758] sm:$0xff]  ;;  %v2253_v32 = vld [vmem:[%s5262_s9 + $0x660] sm:$0xff] }
 0xa33   : > { %2796 = vmatprep.mubr.f32.mxu1 %v2046_v51  ;;  %3686 = vmatpush3.bf16.msra.mxu0 %v3685_v42  ;;  %v2302_v42 = vld [vmem:[%s5262_s9 + $0x7e8] sm:$0xff]  ;;  %v3705_v13 = vpack.c.bf16 %v2284_v44, %v2283_v43  ;;  %v2271_v51 = vld [vmem:[%s5262_s9 + $0x6f0] sm:$0xff] }
 0xa34   : > { %2866 = vmatprep.mubr.f32.mxu0 %v2048_v53  ;;  %3656 = vmatprep.subr.bf16.mxu1 %v3655_v48  ;;  %v2254_v48 = vld [vmem:[%s5262_s9 + $0x668] sm:$0xff]  ;;  %v3707_v49 = vpack.c.bf16 %v2302_v42, %v2301_v41 }
 0xa35   : > { %3688 = vmatprep.subr.bf16.mxu0 %v3687_v6  ;;  %v2272_v6 = vld [vmem:[%s5262_s9 + $0x6f8] sm:$0xff]  ;;  %v3677_v53 = vpack.c.bf16 %v2254_v48, %v2253_v32 }
 0xa36   : > { %3658 = vmatpush3.bf16.msra.mxu1 %v3657_v54  ;;  %v3709_v54 = vpack.c.bf16 %v2286_v50, %v2285_v30 }
 0xa37   : > { %3690 = vmatpush3.bf16.msra.mxu0 %v3689_v0  ;;  %3660 = vmatprep.subr.bf16.mxu1 %v3659_v1  ;;  %v3679_v0 = vpack.c.bf16 %v2272_v6, %v2271_v51  ;;  %v2255_v1 = vld [vmem:[%s5262_s9 + $0x670] sm:$0xff] }
 0xa38   : > { %3692 = vmatprep.subr.bf16.mxu0 %v3691_v7  ;;  %v2288_v7 = vld [vmem:[%s5262_s9 + $0x778] sm:$0xff]  ;;  %v3681_v9 = vpack.c.bf16 %v2256_v2, %v2255_v1 }
 0xa39   : > { %v3713_v14 = vpack.c.bf16 %v2288_v7, %v2287_v5 }
 0xa3a   : > { %3662 = vmatpush3.bf16.msra.mxu1 %v3661_v16 }
 0xa3b   : > { %3694 = vmatpush3.bf16.msra.mxu0 %v3693_v17  ;;  %3664 = vmatprep.subr.bf16.mxu1 %v3663_v18  ;;  %v3008_v17 = vld [vmem:[%s5263_s10] ss:$0 sm:$0xff] }
 0xa3c   : > { %3696 = vmatprep.subr.bf16.mxu0 %v3695_v22 }
 0xa3e   : > { %3666 = vmatpush3.bf16.msra.mxu1 %v3665_v29 }
 0xa3f   : > { %3698 = vmatpush3.bf16.msra.mxu0 %v3697_v33  ;;  %3668 = vmatprep.subr.bf16.mxu1 %v3667_v34 }
 0xa40   : > { %3700 = vmatprep.subr.bf16.mxu0 %v3699_v36 }
 0xa42   : > { %3670 = vmatpush3.bf16.msra.mxu1 %v3669_v62 }
 0xa43   : > { %3702 = vmatpush3.bf16.msra.mxu0 %v3701_v55  ;;  %3672 = vmatprep.subr.bf16.mxu1 %v3671_v57 }
 0xa44   : > { %3704 = vmatprep.subr.bf16.mxu0 %v3703_v63 }
 0xa46   : > { %3674 = vmatpush3.bf16.msra.mxu1 %v3673_v46 }
 0xa47   : > { %3706 = vmatpush3.bf16.msra.mxu0 %v3705_v13  ;;  %3676 = vmatprep.subr.bf16.mxu1 %v3675_v47 }
 0xa48   : > { %3708 = vmatprep.subr.bf16.mxu0 %v3707_v49  ;;  %v3010_v49 = vld [vmem:[%s5265_s12] ss:$0 sm:$0xff] }
 0xa4a   : > { %3678 = vmatpush3.bf16.msra.mxu1 %v3677_v53 }
 0xa4b   : > { %3710 = vmatpush3.bf16.msra.mxu0 %v3709_v54  ;;  %3680 = vmatprep.subr.bf16.mxu1 %v3679_v0 }
 0xa4c   : > { %3712 = vmatprep.subr.bf16.mxu0 %v3711_v4 }
 0xa4e   : > { %3682 = vmatpush3.bf16.msra.mxu1 %v3681_v9 }
 0xa4f   : > { %3714 = vmatpush3.bf16.msra.mxu0 %v3713_v14 }
 0xa51   : > { %2797 = vmatmul.mubr.f32.vlgmr.msra.gmra.mrb[26].mxu1 %v2045_v15 }
 0xa52   : > { %2867 = vmatmul.mubr.f32.vlgmr.msra.gmra.mrb[22].mxu0 %v2047_v59 }
 0xac4   : > { %v3073_v58 = vpop.f32.mrb[20].mxu1  ;;  %v3108_v16 = vpop.f32.mrb[16].mxu0 }
 0xac5   : > { %v3074_v18 = vpop.f32.mrb[21].mxu1  ;;  %v3109_v19 = vpop.f32.mrb[17].mxu0 }
 0xac6   : > { %v3075_v60 = vadd.f32 %v3074_v18, %v3073_v58  ;;  %v3110_v21 = vadd.f32 %v3109_v19, %v3108_v16 }
 0xac8   : > { %v2379_v22 = vadd.f32 %v3075_v60, %v3008_v17 }
 0xaca   : > { %v2449_v23 = vadd.f32 %v3110_v21, %v2379_v22 }
 0xae4   : > { %v3143_v25 = vpop.f32.mrb[22].mxu1  ;;  %v3178_v26 = vpop.f32.mrb[18].mxu0 }
 0xae5   : > { %v3144_v10 = vpop.f32.mrb[23].mxu1  ;;  %v3179_v27 = vpop.f32.mrb[19].mxu0 }
 0xae6   : > { %v3145_v28 = vadd.f32 %v3144_v10, %v3143_v25  ;;  %v3180_v11 = vadd.f32 %v3179_v27, %v3178_v26 }
 0xae8   : > { %v2519_v29 = vadd.f32 %v3145_v28, %v2449_v23 }
 0xaea   : > { %v2589_v33 = vadd.f32 %v3180_v11, %v2519_v29 }
 0xb04   : > { %v3213_v34 = vpop.f32.mrb[24].mxu1 }
 0xb05   : > { %v3248_v56 = vpop.f32.mrb[20].mxu0  ;;  %v3214_v61 = vpop.f32.mrb[25].mxu1 }
 0xb06   : > { %v3215_v35 = vadd.f32 %v3214_v61, %v3213_v34  ;;  %v3249_v36 = vpop.f32.mrb[21].mxu0 }
 0xb07   : > { %v3250_v37 = vadd.f32 %v3249_v36, %v3248_v56 }
 0xb08   : > { %v2659_v38 = vadd.f32 %v3215_v35, %v2589_v33 }
 0xb0a   : > { %v2729_v8 = vadd.f32 %v3250_v37, %v2659_v38 }
 0xb24   : > { %v3283_v3 = vpop.f32.mrb[26].mxu1 }
 0xb25   : > { %v3318_v39 = vpop.f32.mrb[22].mxu0  ;;  %v3284_v62 = vpop.f32.mrb[27].mxu1 }
 0xb26   : > { %v3285_v55 = vadd.f32 %v3284_v62, %v3283_v3  ;;  %v3319_v57 = vpop.f32.mrb[23].mxu0 }
 0xb27   : > { %v3320_v20 = vadd.f32 %v3319_v57, %v3318_v39 }
 0xb28   : > { %v2799_v40 = vadd.f32 %v3285_v55, %v2729_v8 }
 0xb2a   : > { %v2869_v43 = vadd.f32 %v3320_v20, %v2799_v40 }
 0xb2c   : > { %v2872_v63 = vadd.f32 %v2869_v43, %v4202_v24  ;;  %v3009_v24 = vld [vmem:[%s5264_s11] ss:$0 sm:$0xff] }
 0xb2e   : > { %v2875_v44 = vsel %vm448_vm1, %v2872_v63, 0.0 }
 0xb2f   : > { %2876 = vadd.xlane.f32.xlu0 %v2875_v44 }
 0xbbc   : > { %v2877_v45 = vpop.xlane.xlu0 %2876 }
 0xbbd   : > { %v2878_v12 = vmul.f32 0.03125, %v2877_v45 }
 0xbbf   : > { %v2879_v41 = vsub.f32 %v2872_v63, %v2878_v12 }
 0xbc1   : > { %v2880_v42 = vmul.f32 %v2879_v41, %v2879_v41 }
 0xbc3   : > { %v2881_v46 = vsel %vm448_vm1, %v2880_v42, 0.0 }
 0xbc4   : > { %2882 = vadd.xlane.f32.xlu0 %v2881_v46 }
 0xc51   : > { %v2883_v13 = vpop.xlane.xlu0 %2882 }
 0xc52   : > { %v2884_v47 = vmul.f32 0.03125, %v2883_v13 }
 0xc54   : > { %v2885_v32 = vadd.f32 1e-06, %v2884_v47 }
 0xc56   : > { %3789 = vrsqrt.f32 %v2885_v32 }
 0xc60   : > { %v3790_v48 = vpop.eup %3789 }
 0xc61   : > { %v2887_v30 = vmul.f32 %v3790_v48, %v2879_v41 }
 0xc63   : > { %v2894_v50 = vmul.f32 %v3009_v24, %v2887_v30 }
 0xc65   : > { %v2901_v51 = vadd.f32 %v3010_v49, %v2894_v50 }
 0xc67   : > { %2902 = vst.msk [vmem:[%s431_s20] sm:$0xff] %vm448_vm1, %v2901_v51 }
 0xc68   : > { %3804 = shalt.err (!%p3801_p3)
}
 0xc69   : > { %s3805_s1 = scalar_lea.hbm %s5210_s0, 128  ;;  %s3809_s20 = scalar_lea.hbm %s5266_s13, 256 }
 0xc6a   : > { %p3806_p4 = scmp.ne.s32.totalorder %s5210_s0, %s3805_s1  ;;  %p3810_p9 = scmp.lt.u32.totalorder %s5210_s0, %s5266_s13 }
 0xc6b   : > { %p3811_p10 = scmp.lt.u32.totalorder %s3809_s20, %s3805_s1  ;;  %p3813_p12 = scmp.lt.u32.totalorder %s3805_s1, %s5210_s0 }
 0xc6c   : > { %p3807_p7 = pnand %p3806_p4, %p3981_p5 }
 0xc6d   : > { %p3812_p11 = por %p3811_p10, %p3810_p9 }
 0xc6e   : > { %p3808_p8 = pneg %p3807_p7 }
 0xc6f   : > { %p3814_p13 = por %p3813_p12, %p3812_p11 }
 0xc71   : > { %p3815_p0 = pnand %p3814_p13, %p3808_p8 }
 0xc73   : > { %3818 = shalt.err (!%p3815_p0)
}
 0xc74   : > { %3715 = dma.vmem_to_hbm [thread:$0]  (%p3981_p5), %s5212_s21, 128, %s5210_s0, %s2904_s24  }
 0xc75 PF: > { %p3721_p1 = scmp.ge.s32.totalorder %s3853_s28, 2  ;;  %s2929_s30 = sand.u32 1, %s3841_s25  }
 0xc76   : > { %s2930_s29 = scalar_lea.sflag [#allocation3], %s2929_s30 }
 0xc77   : > { %p3718_p2 = pnand %p3721_p1, %p3985_p6 }
 0xc79   : > { %3836 = dma.done.wait (!%p3718_p2), %s2930_s29, 128  }
 0xc7a   : > { %3838 = vsyncadd (!%p3718_p2), %s2930_s29, 4294967168  ;;  %p23_p3 = scmp.ge.s32.totalorder %s3968_s14, 4   ;;  %s5277_s25 = smov %s3845_s26 }
 0xc7b   : > { %s5278_s26 = smov %s3849_s27  ;;  %s5279_s27 = smov %s3979_s17 }
 0xc7c   : > { %s5280_s28 = smov %s3968_s14  ;;  %25 = sbr.rel (!%p23_p3) target bundleno = 8 (0x8), region = 107 }
 0xc83   :  { %2935 = vsyncpa [#allocation3], 1 }
 0xc84   :  { %2937 = vsyncpa [#allocation3 + $0x1], 1 }

</bundles_post_ra>
